<compile_context>
chip_gen: v5e
topology: v5e:2x2
jax: 0.10.0
libtpu: 0.0.40
codegen_flags: <defaults>
</compile_context>

<pallas_src>
import jax
import jax.numpy as jnp
from jax import lax
from jax.experimental import pallas as pl
from jax.experimental.pallas import tpu as pltpu

# ImageNet normalization constants (adv_train=False branch of `normalize`)
_IMAGENET_MEAN = (0.485, 0.456, 0.406)
_IMAGENET_STD = (0.229, 0.224, 0.225)


def _round_up(v: int, m: int) -> int:
    return (v + m - 1) // m * m


def _pick_hw_tile(hw: int, max_hw_tile: int) -> int:
    """Largest lane-aligned (multiple of 128) divisor of `hw` <= max_hw_tile.
    Falls back to the full HW extent (single tile) if none exists."""
    if hw <= max_hw_tile:
        return hw
    t = (max_hw_tile // 128) * 128
    while t >= 128:
        if hw % t == 0:
            return t
        t -= 128
    return hw


def _default_max_hw_tile() -> int:
    # Larger HW tiles on 128-MiB-VMEM chips (v5e/v6e), smaller on v7x (64 MiB).
    try:
        vmem_bytes = pltpu.get_tpu_info().vmem_capacity_bytes
    except Exception:
        vmem_bytes = 64 * 1024 * 1024
    return 8192 if vmem_bytes > (96 << 20) else 4096


def _make_kernel(n_chan: int):
    def kernel(x_ref, w1_ref, b1_ref, w2_ref, b2_ref, o_ref, acc_ref):
        # x_ref  : (C, TILE_N, HW_TILE)   compute dtype; HW lane-dense, TILE_N sublanes
        # w1_ref : (C, HIDDEN, 1, 1)      normalization scale folded in
        # b1_ref : (HIDDEN, 1, 1)         normalization shift folded in
        # w2_ref : (HIDDEN, CLASSES_PAD)  f32; 1/(H*W) of the mean pool folded in
        # b2_ref : (1, CLASSES_PAD)       f32
        # o_ref  : (TILE_N, CLASSES_PAD)  f32 logits (written at the last HW step)
        # acc_ref: (HIDDEN, TILE_N, 1)    f32 running spatial sum for this batch tile
        j = pl.program_id(1)

        x = x_ref[...]                       # (C, TN, HWT)
        w1 = w1_ref[...]                     # (C, H, 1, 1)

        # 1x1 conv over channels as C broadcast FMAs on the VPU (K=3 is far too
        # small for the MXU); one batched slab covers the whole batch tile.
        h = b1_ref[...] + w1[0] * x[0]       # (H, TN, HWT)
        for c in range(1, n_chan):
            h = h + w1[c] * x[c]
        h = jnp.maximum(h, 0.0)              # ReLU

        # Spatial (lane) sum of this HW tile, accumulated in f32; the 1/(H*W)
        # of the average pool is folded into w2 so the plain sum is exact.
        pooled = jnp.sum(h.astype(jnp.float32), axis=-1, keepdims=True)  # (H, TN, 1)

        @pl.when(j == 0)
        def _init():
            acc_ref[...] = jnp.zeros_like(acc_ref)

        acc_ref[...] += pooled

        @pl.when(j == pl.num_programs(1) - 1)
        def _finalize():
            p = acc_ref[...][:, :, 0]        # (H, TN) f32
            # Contract the HIDDEN (sublane) dim directly -> no XLU transpose of p.
            logits = lax.dot_general(
                p, w2_ref[...],
                dimension_numbers=(((0,), (0,)), ((), ())),
                preferred_element_type=jnp.float32)              # (TN, CLASSES_PAD)
            o_ref[...] = (logits + b2_ref[...]).astype(o_ref.dtype)

    return kernel


def pytorch_model_forward(x_nchw, w1, b1, w2, b2, *, adv_train=False,
                          compute_dtype=jnp.float32, tile_n=None,
                          max_hw_tile=None):
    """Fused PytorchModel.forward: identity preprocess -> normalize ->
    1x1 conv -> ReLU -> global average pool -> Linear.
    x_nchw: (N, C, H, W) float32 in [0, 1]. Returns (N, CLASSES) float32 logits.
    compute_dtype=jnp.bfloat16 runs the conv/ReLU in bf16 (recommended on
    v6e/v7x); the pooled sum and classifier head always stay in f32."""
    N, C, H, W = x_nchw.shape
    hidden = w1.shape[1]
    classes = w2.shape[1]
    HW = H * W

    # ---- trace-time affine folds (exact up to fp32 rounding) ----
    if adv_train:                       # normalize(x) = 2x - 1  == (x - 0.5)/0.5
        mean = jnp.full((C,), 0.5, jnp.float32)
        std = jnp.full((C,), 0.5, jnp.float32)
    else:                               # ImageNet (x - mean)/std
        mean = jnp.array(_IMAGENET_MEAN, jnp.float32)
        std = jnp.array(_IMAGENET_STD, jnp.float32)
    w1f32 = w1.astype(jnp.float32)
    w1f = (w1f32 / std[:, None]).reshape(C, hidden, 1, 1).astype(compute_dtype)
    b1f = (b1.astype(jnp.float32) - (mean / std) @ w1f32
           ).reshape(hidden, 1, 1).astype(compute_dtype)

    classes_pad = _round_up(classes, 128)      # lane-dense output / full MXU tiles
    w2f = jnp.zeros((hidden, classes_pad), jnp.float32)
    w2f = w2f.at[:, :classes].set(w2.astype(jnp.float32) * (1.0 / HW))
    b2f = jnp.zeros((1, classes_pad), jnp.float32)
    b2f = b2f.at[:, :classes].set(b2.astype(jnp.float32).reshape(1, classes))

    # ---- batch tiling: two equal sublane-aligned tiles (one per v7x TC) ----
    if tile_n is None:
        tile_n = _round_up(max(1, -(-N // 2)), 8)
    else:
        tile_n = _round_up(max(1, tile_n), 8)
    n_total = _round_up(N, tile_n)
    grid_n = n_total // tile_n

    # ---- HW tiling: bounds the (HIDDEN, TILE_N, HW_TILE) slab in VMEM ----
    if max_hw_tile is None:
        max_hw_tile = _default_max_hw_tile()
    hw_tile = _pick_hw_tile(HW, max_hw_tile)
    grid_hw = HW // hw_tile

    # (N, C, H, W) -> (C, N, HW): the channel dim leaves the (sublane, lane)
    # tile, so C=3 is never padded to 8 sublanes in the x VMEM buffer.
    x = jnp.transpose(x_nchw.reshape(N, C, HW), (1, 0, 2))
    if n_total != N:
        x = jnp.pad(x, ((0, 0), (0, n_total - N), (0, 0)))
    x = x.astype(compute_dtype)

    out = pl.pallas_call(
        _make_kernel(C),
        out_shape=jax.ShapeDtypeStruct((n_total, classes_pad), jnp.float32),
        grid_spec=pltpu.PrefetchScalarGridSpec(
            num_scalar_prefetch=0,
            grid=(grid_n, grid_hw),          # batch "parallel", HW reduction last
            in_specs=[
                pl.BlockSpec((C, tile_n, hw_tile), lambda i, j: (0, i, j)),
                pl.BlockSpec((C, hidden, 1, 1), lambda i, j: (0, 0, 0, 0)),
                pl.BlockSpec((hidden, 1, 1), lambda i, j: (0, 0, 0)),
                pl.BlockSpec((hidden, classes_pad), lambda i, j: (0, 0)),
                pl.BlockSpec((1, classes_pad), lambda i, j: (0, 0)),
            ],
            out_specs=pl.BlockSpec((tile_n, classes_pad), lambda i, j: (i, 0)),
            scratch_shapes=[pltpu.VMEM((hidden, tile_n, 1), jnp.float32)],
        ),
        compiler_params=pltpu.CompilerParams(
            dimension_semantics=("parallel", "arbitrary"),
            vmem_limit_bytes=32 * 1024 * 1024),
    )(x, w1f, b1f, w2f, b2f)

    return out[:N, :classes]


def _reference(x_nchw, w1, b1, w2, b2, adv_train=False):
    if adv_train:
        xn = x_nchw * 2.0 - 1.0
    else:
        mean = jnp.array(_IMAGENET_MEAN, jnp.float32).reshape(1, 3, 1, 1)
        std = jnp.array(_IMAGENET_STD, jnp.float32).reshape(1, 3, 1, 1)
        xn = (x_nchw - mean) / std
    h = jnp.einsum("nchw,cd->ndhw", xn, w1) + b1[None, :, None, None]
    h = jnp.maximum(h, 0.0)
    pooled = jnp.mean(h, axis=(2, 3))                    # (N, HIDDEN)
    return pooled @ w2 + b2


if __name__ == "__main__":
    # Small shapes: batch=16 (2 balanced tiles of 8), channels=3, spatial=16x16,
    # hidden=32, classes=16 (padded to 128 inside the kernel).
    N, C, H, W = 16, 3, 16, 16
    HIDDEN, CLASSES = 32, 16

    key = jax.random.PRNGKey(0)
    kx, k1, kb1, k2, kb2 = jax.random.split(key, 5)
    x = jax.random.uniform(kx, (N, C, H, W), jnp.float32)     # image in [0, 1]
    w1 = jax.random.normal(k1, (C, HIDDEN), jnp.float32) * 0.1
    b1 = jax.random.normal(kb1, (HIDDEN,), jnp.float32) * 0.01
    w2 = jax.random.normal(k2, (HIDDEN, CLASSES), jnp.float32) * 0.1
    b2 = jax.random.normal(kb2, (CLASSES,), jnp.float32) * 0.01

    ref = _reference(x, w1, b1, w2, b2)

    # f32 path; max_hw_tile=128 forces 2 HW grid steps to exercise the accumulator.
    out = jax.block_until_ready(
        pytorch_model_forward(x, w1, b1, w2, b2, max_hw_tile=128))
    assert out.shape == (N, CLASSES)
    assert jnp.allclose(out, ref, atol=1e-4, rtol=1e-4), "f32 mismatch vs reference"

    # bf16 conv/ReLU path (recommended on v6e/v7x); pooled sum + head stay f32.
    out_bf16 = jax.block_until_ready(
        pytorch_model_forward(x, w1, b1, w2, b2,
                              compute_dtype=jnp.bfloat16, max_hw_tile=128))
    assert jnp.allclose(out_bf16, ref, atol=3e-2, rtol=3e-2), "bf16 mismatch vs reference"

    # TODO(synk): get_pytorch_model returns an arbitrary torchvision backbone;
    # a small synthetic classifier (1x1 conv -> ReLU -> GAP -> Linear) stands in.
    # TODO(synk): non-identity preprocess_transforms (resize/crop/etc.) are not
    # implemented; the default [] (identity Compose) path is what is fused here.
    print("KERNEL_OK")
</pallas_src>

<mosaic_0001>
module attributes {stable_mosaic.version = 11 : i64} {
  func.func @kernel(%arg0: i32, %arg1: i32, %arg2: memref<3x8x128xf32, #tpu.memory_space<vmem>>, %arg3: memref<3x32x1x1xf32, #tpu.memory_space<vmem>>, %arg4: memref<32x1x1xf32, #tpu.memory_space<vmem>>, %arg5: memref<32x128xf32, #tpu.memory_space<vmem>>, %arg6: memref<1x128xf32, #tpu.memory_space<vmem>>, %arg7: memref<8x128xf32, #tpu.memory_space<vmem>>, %arg8: memref<32x8x1xf32, #tpu.memory_space<vmem>>) attributes {dimension_semantics = [#tpu.dimension_semantics<parallel>, #tpu.dimension_semantics<arbitrary>], iteration_bounds = array<i64: 2, 2>, scalar_prefetch = 0 : i64, scratch_operands = 1 : i64, tpu.core_type = #tpu.core_type<tc>, window_params = [{transform_indices = @transform_0, window_bounds = array<i64: 3, 8, 128>}, {pipeline_mode = #tpu.pipeline_mode<synchronous>, transform_indices = @transform_1, window_bounds = array<i64: 3, 32, 1, 1>}, {pipeline_mode = #tpu.pipeline_mode<synchronous>, transform_indices = @transform_2, window_bounds = array<i64: 32, 1, 1>}, {pipeline_mode = #tpu.pipeline_mode<synchronous>, transform_indices = @transform_3, window_bounds = array<i64: 32, 128>}, {pipeline_mode = #tpu.pipeline_mode<synchronous>, transform_indices = @transform_4, window_bounds = array<i64: 1, 128>}, {transform_indices = @transform_5, window_bounds = array<i64: 8, 128>}]} {
    %c0 = arith.constant 0 : index
    %c0_0 = arith.constant 0 : index
    %c0_1 = arith.constant 0 : index
    %0 = vector.load %arg2[%c0, %c0_0, %c0_1] : memref<3x8x128xf32, #tpu.memory_space<vmem>>, vector<3x8x128xf32>
    %c0_2 = arith.constant 0 : index
    %c0_3 = arith.constant 0 : index
    %c0_4 = arith.constant 0 : index
    %c0_5 = arith.constant 0 : index
    %1 = vector.load %arg3[%c0_2, %c0_3, %c0_4, %c0_5] : memref<3x32x1x1xf32, #tpu.memory_space<vmem>>, vector<3x32x1x1xf32>
    %c0_6 = arith.constant 0 : index
    %c0_7 = arith.constant 0 : index
    %c0_8 = arith.constant 0 : index
    %2 = vector.load %arg4[%c0_6, %c0_7, %c0_8] : memref<32x1x1xf32, #tpu.memory_space<vmem>>, vector<32x1x1xf32>
    %3 = vector.extract_strided_slice %1 {offsets = [0, 0, 0, 0], sizes = [1, 32, 1, 1], strides = [1, 1, 1, 1]} : vector<3x32x1x1xf32> to vector<1x32x1x1xf32>
    %4 = vector.shape_cast %3 : vector<1x32x1x1xf32> to vector<32x1x1xf32>
    %5 = vector.extract_strided_slice %0 {offsets = [0, 0, 0], sizes = [1, 8, 128], strides = [1, 1, 1]} : vector<3x8x128xf32> to vector<1x8x128xf32>
    %6 = vector.shape_cast %5 : vector<1x8x128xf32> to vector<8x128xf32>
    %7 = vector.shape_cast %6 : vector<8x128xf32> to vector<1x8x128xf32>
    %8 = vector.broadcast %4 : vector<32x1x1xf32> to vector<32x8x128xf32>
    %9 = vector.broadcast %7 : vector<1x8x128xf32> to vector<32x8x128xf32>
    %10 = arith.mulf %8, %9 : vector<32x8x128xf32>
    %11 = vector.broadcast %2 : vector<32x1x1xf32> to vector<32x8x128xf32>
    %12 = arith.addf %11, %10 : vector<32x8x128xf32>
    %13 = vector.extract_strided_slice %1 {offsets = [1, 0, 0, 0], sizes = [1, 32, 1, 1], strides = [1, 1, 1, 1]} : vector<3x32x1x1xf32> to vector<1x32x1x1xf32>
    %14 = vector.shape_cast %13 : vector<1x32x1x1xf32> to vector<32x1x1xf32>
    %15 = vector.extract_strided_slice %0 {offsets = [1, 0, 0], sizes = [1, 8, 128], strides = [1, 1, 1]} : vector<3x8x128xf32> to vector<1x8x128xf32>
    %16 = vector.shape_cast %15 : vector<1x8x128xf32> to vector<8x128xf32>
    %17 = vector.shape_cast %16 : vector<8x128xf32> to vector<1x8x128xf32>
    %18 = vector.broadcast %14 : vector<32x1x1xf32> to vector<32x8x128xf32>
    %19 = vector.broadcast %17 : vector<1x8x128xf32> to vector<32x8x128xf32>
    %20 = arith.mulf %18, %19 : vector<32x8x128xf32>
    %21 = arith.addf %12, %20 : vector<32x8x128xf32>
    %22 = vector.extract_strided_slice %1 {offsets = [2, 0, 0, 0], sizes = [1, 32, 1, 1], strides = [1, 1, 1, 1]} : vector<3x32x1x1xf32> to vector<1x32x1x1xf32>
    %23 = vector.shape_cast %22 : vector<1x32x1x1xf32> to vector<32x1x1xf32>
    %24 = vector.extract_strided_slice %0 {offsets = [2, 0, 0], sizes = [1, 8, 128], strides = [1, 1, 1]} : vector<3x8x128xf32> to vector<1x8x128xf32>
    %25 = vector.shape_cast %24 : vector<1x8x128xf32> to vector<8x128xf32>
    %26 = vector.shape_cast %25 : vector<8x128xf32> to vector<1x8x128xf32>
    %27 = vector.broadcast %23 : vector<32x1x1xf32> to vector<32x8x128xf32>
    %28 = vector.broadcast %26 : vector<1x8x128xf32> to vector<32x8x128xf32>
    %29 = arith.mulf %27, %28 : vector<32x8x128xf32>
    %30 = arith.addf %21, %29 : vector<32x8x128xf32>
    %cst = arith.constant 0.000000e+00 : f32
    %31 = vector.broadcast %cst : f32 to vector<32x8x128xf32>
    %32 = arith.maximumf %30, %31 : vector<32x8x128xf32>
    %cst_9 = arith.constant dense<0.000000e+00> : vector<32x8xf32>
    %33 = vector.multi_reduction <add>, %32, %cst_9 [2] : vector<32x8x128xf32> to vector<32x8xf32>
    %34 = vector.shape_cast %33 : vector<32x8xf32> to vector<32x8x1xf32>
    %c0_i32 = arith.constant 0 : i32
    %35 = arith.cmpi eq, %arg1, %c0_i32 : i32
    %36 = arith.extui %35 : i1 to i32
    %c0_i32_10 = arith.constant 0 : i32
    %37 = arith.cmpi ne, %36, %c0_i32_10 : i32
    scf.if %37 {
      %cst_18 = arith.constant 0.000000e+00 : f32
      %44 = vector.broadcast %cst_18 : f32 to vector<32x8x1xf32>
      %c0_19 = arith.constant 0 : index
      %c0_20 = arith.constant 0 : index
      %c0_21 = arith.constant 0 : index
      %45 = vector.load %arg8[%c0_19, %c0_20, %c0_21] : memref<32x8x1xf32, #tpu.memory_space<vmem>>, vector<32x8x1xf32>
      tpu.vector_store %arg8[%c0_19, %c0_20, %c0_21], %44 {strides = array<i32>} : memref<32x8x1xf32, #tpu.memory_space<vmem>>, vector<32x8x1xf32>,
    } else {
    }
    %c0_11 = arith.constant 0 : index
    %c0_12 = arith.constant 0 : index
    %c0_13 = arith.constant 0 : index
    %38 = vector.load %arg8[%c0_11, %c0_12, %c0_13] : memref<32x8x1xf32, #tpu.memory_space<vmem>>, vector<32x8x1xf32>
    %39 = arith.addf %38, %34 : vector<32x8x1xf32>
    %c0_14 = arith.constant 0 : index
    %c0_15 = arith.constant 0 : index
    %c0_16 = arith.constant 0 : index
    %40 = vector.load %arg8[%c0_14, %c0_15, %c0_16] : memref<32x8x1xf32, #tpu.memory_space<vmem>>, vector<32x8x1xf32>
    tpu.vector_store %arg8[%c0_14, %c0_15, %c0_16], %39 {strides = array<i32>} : memref<32x8x1xf32, #tpu.memory_space<vmem>>, vector<32x8x1xf32>,
    %c1_i32 = arith.constant 1 : i32
    %41 = arith.cmpi eq, %arg1, %c1_i32 : i32
    %42 = arith.extui %41 : i1 to i32
    %c0_i32_17 = arith.constant 0 : i32
    %43 = arith.cmpi ne, %42, %c0_i32_17 : i32
    scf.if %43 {
      %c0_18 = arith.constant 0 : index
      %c0_19 = arith.constant 0 : index
      %c0_20 = arith.constant 0 : index
      %44 = vector.load %arg8[%c0_18, %c0_19, %c0_20] : memref<32x8x1xf32, #tpu.memory_space<vmem>>, vector<32x8x1xf32>
      %45 = vector.shape_cast %44 : vector<32x8x1xf32> to vector<32x8xf32>
      %c0_21 = arith.constant 0 : index
      %c0_22 = arith.constant 0 : index
      %46 = vector.load %arg5[%c0_21, %c0_22] : memref<32x128xf32, #tpu.memory_space<vmem>>, vector<32x128xf32>
      %cst_23 = arith.constant dense<0.000000e+00> : vector<8x128xf32>
      %47 = tpu.matmul %45, %46, %cst_23 {dimension_numbers = #tpu.dot_dimension_numbers<[0], [0], [1], [1], [0, 1, 1, 1], [], []>} : vector<32x8xf32>, vector<32x128xf32>, vector<8x128xf32> -> vector<8x128xf32>
      %c0_24 = arith.constant 0 : index
      %c0_25 = arith.constant 0 : index
      %48 = vector.load %arg6[%c0_24, %c0_25] : memref<1x128xf32, #tpu.memory_space<vmem>>, vector<1x128xf32>
      %49 = vector.broadcast %48 : vector<1x128xf32> to vector<8x128xf32>
      %50 = arith.addf %47, %49 : vector<8x128xf32>
      %c0_26 = arith.constant 0 : index
      %c0_27 = arith.constant 0 : index
      %51 = vector.load %arg7[%c0_26, %c0_27] : memref<8x128xf32, #tpu.memory_space<vmem>>, vector<8x128xf32>
      tpu.vector_store %arg7[%c0_26, %c0_27], %50 {strides = array<i32>} : memref<8x128xf32, #tpu.memory_space<vmem>>, vector<8x128xf32>,
    } else {
    }
    return
  }
  func.func @transform_0(%arg0: i32, %arg1: i32) -> (i32, i32, i32) {
    %c0_i32 = arith.constant 0 : i32
    %c0_i32_0 = arith.constant 0 : i32
    return %c0_i32, %arg0, %arg1 : i32, i32, i32
  }
  func.func @transform_1(%arg0: i32, %arg1: i32) -> (i32, i32, i32, i32) {
    %c0_i32 = arith.constant 0 : i32
    %c0_i32_0 = arith.constant 0 : i32
    %c0_i32_1 = arith.constant 0 : i32
    %c0_i32_2 = arith.constant 0 : i32
    %c0_i32_3 = arith.constant 0 : i32
    return %c0_i32, %c0_i32_0, %c0_i32_1, %c0_i32_2 : i32, i32, i32, i32
  }
  func.func @transform_2(%arg0: i32, %arg1: i32) -> (i32, i32, i32) {
    %c0_i32 = arith.constant 0 : i32
    %c0_i32_0 = arith.constant 0 : i32
    %c0_i32_1 = arith.constant 0 : i32
    %c0_i32_2 = arith.constant 0 : i32
    return %c0_i32, %c0_i32_0, %c0_i32_1 : i32, i32, i32
  }
  func.func @transform_3(%arg0: i32, %arg1: i32) -> (i32, i32) {
    %c0_i32 = arith.constant 0 : i32
    %c0_i32_0 = arith.constant 0 : i32
    %c0_i32_1 = arith.constant 0 : i32
    return %c0_i32, %c0_i32_0 : i32, i32
  }
  func.func @transform_4(%arg0: i32, %arg1: i32) -> (i32, i32) {
    %c0_i32 = arith.constant 0 : i32
    %c0_i32_0 = arith.constant 0 : i32
    %c0_i32_1 = arith.constant 0 : i32
    return %c0_i32, %c0_i32_0 : i32, i32
  }
  func.func @transform_5(%arg0: i32, %arg1: i32) -> (i32, i32) {
    %c0_i32 = arith.constant 0 : i32
    %c0_i32_0 = arith.constant 0 : i32
    return %arg0, %c0_i32 : i32, i32
  }
}

</mosaic_0001>

<bundles_post_ra>
// kernel: tpu_custom_call.1
= control target key start
LH: loop header
LB: loop body
LE: loop exit
PB: predicated region body
PF: predicated region fallthrough
CT: control target
= control target key end

     0   :  { %s3567_s0 = inlined_call_operand.vmem [shape: f32[3,16,256], index: 0, kind: input, shape index: {}]   ;;  %s3568_s1 = inlined_call_operand.vmem [shape: f32[3,32,1,1], index: 1, kind: input, shape index: {}]   ;;  %s3569_s2 = inlined_call_operand.vmem [shape: f32[32,1,1], index: 2, kind: input, shape index: {}]   ;;  %s3570_s3 = inlined_call_operand.vmem [shape: f32[32,128], index: 3, kind: input, shape index: {}]   ;;  %s3571_s4 = inlined_call_operand.vmem [shape: f32[1,128], index: 4, kind: input, shape index: {}]   ;;  %s3572_s5 = inlined_call_operand.hbm [shape: f32[16,128], index: 5, kind: output, shape index: {}]  }
   0x1   :  { %3574 = sst [smem:[#allocation8_spill]] %s3567_s0 }
   0x2   :  { %3575 = sst [smem:[#allocation9_spill]] %s3568_s1 }
   0x3   :  { %10 = vsyncpa [#allocation5], 0 }
   0x4   :  { %12 = vsyncpa [#allocation5 + $0x1], 0  ;;  %s2387_s18 = smov 0   ;;  %s2389_s19 = smov 0  }
   0x5   :  { %s2391_s20 = smov 0   ;;  %s2393_s21 = smov 0  }
   0x6   :  { %s2395_s22 = smov 0   ;;  %s2397_s23 = smov 0  }
   0x7   :  { %s2399_s24 = smov 0   ;;  %s2401_s25 = smov 0  }
   0x8   :  { %s2403_s26 = smov 0   ;;  %s2405_s27 = smov 0  }
   0x9 LB: > { %s1999_s28 = sadd.s32 4294967295, %s2352_s27   ;;  %s2000_s29 = sadd.s32 4294967294, %s2352_s27   ;;  %s2352_s27 = sphi %s2405_s27, %s18_s27   ;;  %s2348_s26 = sphi %s2403_s26, %s3591_s26   ;;  %s2344_s25 = sphi %s2401_s25, %s3590_s25   ;;  %s2340_s24 = sphi %s2399_s24, %s3589_s24   ;;  %s2336_s23 = sphi %s2397_s23, %s3588_s23   ;;  %s2332_s22 = sphi %s2395_s22, %s3587_s22   ;;  %s2328_s21 = sphi %s2393_s21, %s3586_s21   ;;  %s2324_s20 = sphi %s2391_s20, %s3585_s20   ;;  %s2320_s19 = sphi %s2389_s19, %s3584_s19   ;;  %s2316_s18 = sphi %s2387_s18, %s3583_s18  }
   0xa   : > { %s27_s30 = sadd.s32 1, %s2344_s25  ;;  %s30_s6 = sadd.s32 1, %s2348_s26 }
   0xb   : > { %p28_p0 = scmp.ge.s32.totalorder %s27_s30, 2  ;;  %s39_s7 = sadd.s32 1, %s2332_s22 }
   0xc   : > { %p46_p1 = scmp.ne.s32.totalorder %s2332_s22, %s2328_s21  ;;  %p47_p2 = scmp.eq.s32.totalorder %s2352_s27, 0 }
   0xd   : > { %s3593_s30 = smov (%p28_p0, %s27_s30), 0  ;;  %s3595_s6 = smov (!%p28_p0, %s30_s6), %s2348_s26 }
   0xe   : > { %s35_s8 = ssub.s32 %s2344_s25, %s3593_s30  ;;  %p2450_p3 = por %p47_p2, %p46_p1 }
   0xf   : > { %p32_p4 = scmp.ge.s32.totalorder %s3595_s6, 2  ;;  %s149_s10 = sadd.s32 1, %s2324_s20 }
  0x10   : > { %p159_p5 = scmp.ne.s32.totalorder %s2324_s20, %s2320_s19  ;;  %p160_p6 = scmp.eq.s32.totalorder %s1999_s28, 3 }
  0x11   : > { %s3597_s6 = smov (%p32_p4, %s3595_s6), 0  ;;  %p165_p8 = scmp.ne.s32.totalorder %s2320_s19, %s2316_s18 }
  0x12   : > { %3577 = sst [smem:[#allocation7_spill]] %s3597_s6  ;;  %p2459_p7 = por %p160_p6, %p159_p5 }
  0x13   : > { %s34_s12 = ssub.s32 %s2348_s26, %s3597_s6  ;;  %p166_p9 = scmp.eq.s32.totalorder %s2000_s29, 3 }
  0x14   : > { %s36_s13 = sor.u32 %s35_s8, %s34_s12  ;;  %p147_p10 = scmp.eq.s32.totalorder %s34_s12, 0 }
  0x15   : > { %p37_p11 = scmp.eq.s32.totalorder %s36_s13, 0  ;;  %p2467_p12 = por %p166_p9, %p165_p8 }
  0x16   : > { %s2472_s15 = scalar_select %p147_p10, %s2324_s20, %s149_s10  }
  0x17   : > { %s2475_s16 = scalar_select %p37_p11, %s2332_s22, %s39_s7  }
  0x18   : > { %p2002_p13 = scmp.ge.s32.totalorder %s2352_s27, 4 }
  0x1a   : > { %194 = sbr.rel (%p2002_p13) target bundleno = 44 (0x2c), region = 32 }
  0x1f   : > { %197 = sbr.rel (!%p2450_p3) target bundleno = 44 (0x2c), region = 36  ;;  %s199_s17 = sand.u32 (%p2450_p3), 1, %s2332_s22  }
  0x20   : > { %s2003_s28 = sshll.u32 (%p2450_p3), %s2348_s26, 1  ;;  %s2014_s29 = smul.u32 (%p2450_p3), 24, %s199_s17 }
  0x21   : > { %s203_s8 = sadd.s32 (%p2450_p3), %s2344_s25, %s2003_s28  ;;  %s3580_s0 = sld [smem:[#allocation8_spill]] (%p2450_p3) }
  0x22   : > { %s2004_s12 = sshll.u32 (%p2450_p3), %s203_s8, 3  ;;  %s201_s7 = scalar_lea.vmem (%p2450_p3), [#allocation3], %s2014_s29 }
  0x27   : > { %s205_s10 = scalar_lea.vmem %s3580_s0, %s2004_s12 }
  0x28   : > { %v238_v0 = vld [vmem:[%s205_s10] sm:$0xff] }
  0x29   : > { %v240_v1 = vld [vmem:[%s205_s10 + $0x20] sm:$0xff]  ;;  %239 = vst [vmem:[%s201_s7] sm:$0xff] %v238_v0 }
  0x2a   : > { %v242_v2 = vld [vmem:[%s205_s10 + $0x40] sm:$0xff]  ;;  %241 = vst [vmem:[%s201_s7 + $0x8] sm:$0xff] %v240_v1 }
  0x2b   : > { %243 = vst [vmem:[%s201_s7 + $0x10] sm:$0xff] %v242_v2 }
  0x2c PF: > { %p2005_p0 = scmp.ge.s32.totalorder %s2352_s27, 1  ;;  %p248_p1 = scmp.lt.s32.totalorder %s2352_s27, 5 }
  0x2e   : > { %p249_p2 = pnand %p2005_p0, %p248_p1 }
  0x2f   : > { %s3581_s1 = sld [smem:[#allocation9_spill]] (!%p249_p2)  ;;  %s255_s10 = sand.u32 (!%p249_p2), 1, %s2328_s21  }
  0x30   : > { %252 = sbr.rel (%p249_p2) target bundleno = 1181 (0x49d), region = 74  ;;  %p2007_p3 = scmp.ne.s32.totalorder (!%p249_p2), %s2336_s23, 0 }
  0x31   : > { %s2015_s17 = smul.u32 (!%p249_p2), 24, %s255_s10 }
  0x33   : > { %s2795_s13 = scalar_lea.vmem (!%p249_p2), [#allocation3], %s2015_s17 }
  0x35   : > { %v2110_v3 = vld [vmem:[%s3581_s1 + $0x4] ss:$0 sm:$0xff]  ;;  %v2354_v4 = vmov 0   ;;  %v2111_v5 = vld [vmem:[%s3581_s1 + $0x2] ss:$0 sm:$0xff] }
  0x36   : > { %2109 = vset.pattern.permute.xlu2 %v2354_v4  ;;  %2108 = vset.pattern.permute.xlu1 %v2354_v4  ;;  %v2112_v6 = vld [vmem:[%s3581_s1] ss:$0 sm:$0xff]  ;;  %v2113_v7 = vld [vmem:[%s3581_s1 + $0x5] ss:$0 sm:$0xff]  ;;  %v2114_v8 = vld [vmem:[%s3581_s1 + $0x3] ss:$0 sm:$0xff] }
  0x37   : > { %2107 = vset.pattern.permute.xlu0 %v2354_v4  ;;  %494 = vperm.xlu2 %2109, %v2110_v3   ;;  %v2115_v9 = vld [vmem:[%s3581_s1 + $0x1] ss:$0 sm:$0xff]  ;;  %v2116_v10 = vld [vmem:[%s3581_s1 + $0x8] ss:$0 sm:$0xff]  ;;  %v2117_v11 = vld [vmem:[%s3581_s1 + $0x7] ss:$0 sm:$0xff] }
  0x38   : > { %486 = vperm.xlu1 %2108, %v2111_v5   ;;  %478 = vperm.xlu0 %2107, %v2112_v6   ;;  %v2118_v12 = vld [vmem:[%s3581_s1 + $0x6] ss:$0 sm:$0xff]  ;;  %v2119_v13 = vld [vmem:[%s3581_s1 + $0xb] ss:$0 sm:$0xff]  ;;  %v2120_v14 = vld [vmem:[%s3581_s1 + $0xa] ss:$0 sm:$0xff] }
  0x39   : > { %v2121_v15 = vld [vmem:[%s3581_s1 + $0x9] ss:$0 sm:$0xff]  ;;  %v2122_v16 = vld [vmem:[%s3581_s1 + $0xe] ss:$0 sm:$0xff]  ;;  %v2123_v17 = vld [vmem:[%s3581_s1 + $0xd] ss:$0 sm:$0xff] }
  0x3a   : > { %v2124_v18 = vld [vmem:[%s3581_s1 + $0xc] ss:$0 sm:$0xff]  ;;  %v2125_v19 = vld [vmem:[%s3581_s1 + $0x11] ss:$0 sm:$0xff]  ;;  %v2126_v20 = vld [vmem:[%s3581_s1 + $0x10] ss:$0 sm:$0xff] }
  0x3b   : > { %v2127_v21 = vld [vmem:[%s3581_s1 + $0xf] ss:$0 sm:$0xff]  ;;  %v2128_v22 = vld [vmem:[%s3581_s1 + $0x14] ss:$0 sm:$0xff]  ;;  %v2129_v23 = vld [vmem:[%s3581_s1 + $0x13] ss:$0 sm:$0xff] }
  0x3c   : > { %v2130_v24 = vld [vmem:[%s3581_s1 + $0x12] ss:$0 sm:$0xff]  ;;  %v2131_v25 = vld [vmem:[%s3581_s1 + $0x17] ss:$0 sm:$0xff]  ;;  %v2132_v26 = vld [vmem:[%s3581_s1 + $0x16] ss:$0 sm:$0xff] }
  0x3d   : > { %v2133_v27 = vld [vmem:[%s3581_s1 + $0x15] ss:$0 sm:$0xff]  ;;  %v2134_v28 = vld [vmem:[%s3581_s1 + $0x1a] ss:$0 sm:$0xff]  ;;  %v2135_v29 = vld [vmem:[%s3581_s1 + $0x19] ss:$0 sm:$0xff] }
  0x3e   : > { %v2136_v30 = vld [vmem:[%s3581_s1 + $0x18] ss:$0 sm:$0xff]  ;;  %v2137_v31 = vld [vmem:[%s3581_s1 + $0x1d] ss:$0 sm:$0xff]  ;;  %v2138_v32 = vld [vmem:[%s3581_s1 + $0x1c] ss:$0 sm:$0xff] }
  0x3f   : > { %498 = vperm.xlu2 %2109, %v2113_v7   ;;  %v2139_v33 = vld [vmem:[%s3581_s1 + $0x1b] ss:$0 sm:$0xff]  ;;  %v2140_v34 = vld [vmem:[%s3569_s2] ss:$0 sm:$0xff]  ;;  %v2141_v35 = vld [vmem:[%s3581_s1 + $0x1f] ss:$0 sm:$0xff] }
  0x40   : > { %490 = vperm.xlu1 %2108, %v2114_v8   ;;  %482 = vperm.xlu0 %2107, %v2115_v9   ;;  %v2142_v36 = vld [vmem:[%s3581_s1 + $0x1e] ss:$0 sm:$0xff]  ;;  %v2143_v37 = vld [vmem:[%s3569_s2 + $0x3] ss:$0 sm:$0xff]  ;;  %v2144_v38 = vld [vmem:[%s3569_s2 + $0x2] ss:$0 sm:$0xff] }
  0x41   : > { %v2145_v39 = vld [vmem:[%s3569_s2 + $0x1] ss:$0 sm:$0xff]  ;;  %v2146_v41 = vld [vmem:[%s3569_s2 + $0x6] ss:$0 sm:$0xff]  ;;  %v2147_v42 = vld [vmem:[%s3569_s2 + $0x5] ss:$0 sm:$0xff] }
  0x42   : > { %v2148_v43 = vld [vmem:[%s3569_s2 + $0x4] ss:$0 sm:$0xff]  ;;  %v2149_v45 = vld [vmem:[%s3569_s2 + $0x9] ss:$0 sm:$0xff]  ;;  %v2150_v46 = vld [vmem:[%s3569_s2 + $0x8] ss:$0 sm:$0xff] }
  0x43   : > { %v2151_v47 = vld [vmem:[%s3569_s2 + $0x7] ss:$0 sm:$0xff]  ;;  %v2152_v49 = vld [vmem:[%s3569_s2 + $0xc] ss:$0 sm:$0xff]  ;;  %v2153_v50 = vld [vmem:[%s3569_s2 + $0xb] ss:$0 sm:$0xff] }
  0x44   : > { %v2154_v51 = vld [vmem:[%s3569_s2 + $0xa] ss:$0 sm:$0xff]  ;;  %v2155_v55 = vld [vmem:[%s3569_s2 + $0xf] ss:$0 sm:$0xff]  ;;  %v2156_v56 = vld [vmem:[%s3569_s2 + $0xe] ss:$0 sm:$0xff] }
  0x45   : > { %v2157_v57 = vld [vmem:[%s3569_s2 + $0xd] ss:$0 sm:$0xff]  ;;  %v2158_v61 = vld [vmem:[%s3569_s2 + $0x12] ss:$0 sm:$0xff]  ;;  %v2159_v62 = vld [vmem:[%s3569_s2 + $0x11] ss:$0 sm:$0xff] }
  0x46   : > { %v2160_v63 = vld [vmem:[%s3569_s2 + $0x10] ss:$0 sm:$0xff]  ;;  %v2161_v3 = vld [vmem:[%s3569_s2 + $0x15] ss:$0 sm:$0xff]  ;;  %v2162_v4 = vld [vmem:[%s3569_s2 + $0x14] ss:$0 sm:$0xff] }
  0x47   : > { %510 = vperm.xlu2 %2109, %v2116_v10   ;;  %v2163_v5 = vld [vmem:[%s3569_s2 + $0x13] ss:$0 sm:$0xff]  ;;  %v2164_v9 = vld [vmem:[%s3569_s2 + $0x18] ss:$0 sm:$0xff]  ;;  %v2165_v10 = vld [vmem:[%s3569_s2 + $0x17] ss:$0 sm:$0xff] }
  0x48   : > { %506 = vperm.xlu1 %2108, %v2117_v11   ;;  %502 = vperm.xlu0 %2107, %v2118_v12   ;;  %v2166_v11 = vld [vmem:[%s3569_s2 + $0x16] ss:$0 sm:$0xff] }
  0x4f   : > { %522 = vperm.xlu2 %2109, %v2119_v13  }
  0x50   : > { %518 = vperm.xlu1 %2108, %v2120_v14   ;;  %514 = vperm.xlu0 %2107, %v2121_v15   ;;  %v2167_v15 = vld [vmem:[%s3569_s2 + $0x1b] ss:$0 sm:$0xff] }
  0x57   : > { %534 = vperm.xlu2 %2109, %v2122_v16   ;;  %v2168_v16 = vld [vmem:[%s3569_s2 + $0x1a] ss:$0 sm:$0xff] }
  0x58   : > { %530 = vperm.xlu1 %2108, %v2123_v17   ;;  %526 = vperm.xlu0 %2107, %v2124_v18   ;;  %v2169_v17 = vld [vmem:[%s3569_s2 + $0x19] ss:$0 sm:$0xff] }
  0x5f   : > { %546 = vperm.xlu2 %2109, %v2125_v19  }
  0x60   : > { %542 = vperm.xlu1 %2108, %v2126_v20   ;;  %538 = vperm.xlu0 %2107, %v2127_v21   ;;  %v2170_v21 = vld [vmem:[%s3569_s2 + $0x1e] ss:$0 sm:$0xff] }
  0x67   : > { %558 = vperm.xlu2 %2109, %v2128_v22   ;;  %v2171_v22 = vld [vmem:[%s3569_s2 + $0x1d] ss:$0 sm:$0xff] }
  0x68   : > { %554 = vperm.xlu1 %2108, %v2129_v23   ;;  %550 = vperm.xlu0 %2107, %v2130_v24   ;;  %v2172_v23 = vld [vmem:[%s3569_s2 + $0x1c] ss:$0 sm:$0xff] }
  0x6f   : > { %570 = vperm.xlu2 %2109, %v2131_v25  }
  0x70   : > { %566 = vperm.xlu1 %2108, %v2132_v26   ;;  %562 = vperm.xlu0 %2107, %v2133_v27   ;;  %v2173_v27 = vld [vmem:[%s3581_s1 + $0x21] ss:$0 sm:$0xff] }
  0x77   : > { %582 = vperm.xlu2 %2109, %v2134_v28   ;;  %v2174_v28 = vld [vmem:[%s3581_s1 + $0x20] ss:$0 sm:$0xff] }
  0x78   : > { %578 = vperm.xlu1 %2108, %v2135_v29   ;;  %574 = vperm.xlu0 %2107, %v2136_v30   ;;  %v2175_v29 = vld [vmem:[%s3569_s2 + $0x1f] ss:$0 sm:$0xff] }
  0x7f   : > { %594 = vperm.xlu2 %2109, %v2137_v31  }
  0x80   : > { %590 = vperm.xlu1 %2108, %v2138_v32   ;;  %586 = vperm.xlu0 %2107, %v2139_v33   ;;  %v2176_v33 = vld [vmem:[%s3581_s1 + $0x24] ss:$0 sm:$0xff] }
  0x87   : > { %702 = vperm.xlu2 %2109, %v2140_v34   ;;  %v2177_v34 = vld [vmem:[%s3581_s1 + $0x23] ss:$0 sm:$0xff] }
  0x88   : > { %602 = vperm.xlu1 %2108, %v2141_v35   ;;  %598 = vperm.xlu0 %2107, %v2142_v36   ;;  %v2178_v35 = vld [vmem:[%s3581_s1 + $0x22] ss:$0 sm:$0xff] }
  0x8f   : > { %714 = vperm.xlu2 %2109, %v2143_v37  }
  0x90   : > { %710 = vperm.xlu1 %2108, %v2144_v38   ;;  %706 = vperm.xlu0 %2107, %v2145_v39   ;;  %v2179_v39 = vld [vmem:[%s3581_s1 + $0x27] ss:$0 sm:$0xff] }
  0x91   : > { %v2596_v40 = vpop.permute.xlu2 %494 }
  0x97   : > { %726 = vperm.xlu2 %2109, %v2146_v41   ;;  %v2180_v41 = vld [vmem:[%s3581_s1 + $0x26] ss:$0 sm:$0xff] }
  0x98   : > { %722 = vperm.xlu1 %2108, %v2147_v42   ;;  %718 = vperm.xlu0 %2107, %v2148_v43   ;;  %v2181_v42 = vld [vmem:[%s3581_s1 + $0x25] ss:$0 sm:$0xff] }
  0x99   : > { %v2607_v44 = vpop.permute.xlu2 %498 }
  0x9f   : > { %738 = vperm.xlu2 %2109, %v2149_v45  }
  0xa0   : > { %734 = vperm.xlu1 %2108, %v2150_v46   ;;  %730 = vperm.xlu0 %2107, %v2151_v47   ;;  %v2182_v47 = vld [vmem:[%s3581_s1 + $0x2a] ss:$0 sm:$0xff] }
  0xa1   : > { %v2618_v48 = vpop.permute.xlu2 %510 }
  0xa7   : > { %750 = vperm.xlu2 %2109, %v2152_v49   ;;  %v2183_v49 = vld [vmem:[%s3581_s1 + $0x29] ss:$0 sm:$0xff] }
  0xa8   : > { %746 = vperm.xlu1 %2108, %v2153_v50   ;;  %742 = vperm.xlu0 %2107, %v2154_v51   ;;  %v2184_v50 = vld [vmem:[%s3581_s1 + $0x28] ss:$0 sm:$0xff] }
  0xa9   : > { %v2629_v52 = vpop.permute.xlu2 %522 }
  0xaa   : > { %v2631_v53 = vpop.permute.xlu1 %486  ;;  %v2633_v54 = vpop.permute.xlu0 %478 }
  0xaf   : > { %762 = vperm.xlu2 %2109, %v2155_v55  }
  0xb0   : > { %758 = vperm.xlu1 %2108, %v2156_v56   ;;  %754 = vperm.xlu0 %2107, %v2157_v57   ;;  %v2185_v57 = vld [vmem:[%s3581_s1 + $0x2d] ss:$0 sm:$0xff] }
  0xb1   : > { %v2644_v58 = vpop.permute.xlu2 %534 }
  0xb2   : > { %v2646_v59 = vpop.permute.xlu1 %490  ;;  %v2648_v60 = vpop.permute.xlu0 %482 }
  0xb7   : > { %774 = vperm.xlu2 %2109, %v2158_v61   ;;  %v2186_v61 = vld [vmem:[%s3581_s1 + $0x2c] ss:$0 sm:$0xff] }
  0xb8   : > { %770 = vperm.xlu1 %2108, %v2159_v62   ;;  %766 = vperm.xlu0 %2107, %v2160_v63   ;;  %v2187_v62 = vld [vmem:[%s3581_s1 + $0x2b] ss:$0 sm:$0xff]  ;;  %v2798_v63 = vld [vmem:[%s2795_s13] sm:$0xff] }
  0xb9   : > { %v2659_v0 = vpop.permute.xlu2 %546 }
  0xba   : > { %v2661_v1 = vpop.permute.xlu1 %506  ;;  %v2663_v2 = vpop.permute.xlu0 %502 }
  0xbf   : > { %786 = vperm.xlu2 %2109, %v2161_v3  }
  0xc0   : > { %782 = vperm.xlu1 %2108, %v2162_v4   ;;  %778 = vperm.xlu0 %2107, %v2163_v5  }
  0xc1   : > { %v2674_v6 = vpop.permute.xlu2 %558 }
  0xc2   : > { %v2676_v7 = vpop.permute.xlu1 %518  ;;  %v2678_v8 = vpop.permute.xlu0 %514 }
  0xc7   : > { %798 = vperm.xlu2 %2109, %v2164_v9  }
  0xc8   : > { %794 = vperm.xlu1 %2108, %v2165_v10   ;;  %790 = vperm.xlu0 %2107, %v2166_v11   ;;  %v2188_v11 = vld [vmem:[%s3581_s1 + $0x30] ss:$0 sm:$0xff] }
  0xc9   : > { %v2689_v12 = vpop.permute.xlu2 %570 }
  0xca   : > { %v2691_v13 = vpop.permute.xlu1 %530  ;;  %v2693_v14 = vpop.permute.xlu0 %526 }
  0xcb   : > { %v617_v3 = vmul.f32 %v2693_v14, %v2798_v63  ;;  %v2190_v14 = vld [vmem:[%s3581_s1 + $0x2e] ss:$0 sm:$0xff] }
  0xcf   : > { %810 = vperm.xlu2 %2109, %v2167_v15   ;;  %v2189_v15 = vld [vmem:[%s3581_s1 + $0x2f] ss:$0 sm:$0xff] }
  0xd0   : > { %806 = vperm.xlu1 %2108, %v2168_v16   ;;  %802 = vperm.xlu0 %2107, %v2169_v17  }
  0xd1   : > { %v2704_v18 = vpop.permute.xlu2 %582 }
  0xd2   : > { %v2706_v19 = vpop.permute.xlu1 %542  ;;  %v2708_v20 = vpop.permute.xlu0 %538 }
  0xd3   : > { %v620_v16 = vmul.f32 %v2708_v20, %v2798_v63  ;;  %v2193_v20 = vld [vmem:[%s3581_s1 + $0x31] ss:$0 sm:$0xff] }
  0xd7   : > { %822 = vperm.xlu2 %2109, %v2170_v21  }
  0xd8   : > { %818 = vperm.xlu1 %2108, %v2171_v22   ;;  %814 = vperm.xlu0 %2107, %v2172_v23  }
  0xd9   : > { %v2719_v24 = vpop.permute.xlu2 %594 }
  0xda   : > { %v2721_v25 = vpop.permute.xlu1 %554  ;;  %v2723_v26 = vpop.permute.xlu0 %550 }
  0xdf   : > { %930 = vperm.xlu2 %2109, %v2173_v27   ;;  %v2191_v27 = vld [vmem:[%s3581_s1 + $0x33] ss:$0 sm:$0xff] }
  0xe0   : > { %926 = vperm.xlu1 %2108, %v2174_v28   ;;  %826 = vperm.xlu0 %2107, %v2175_v29   ;;  %v2192_v28 = vld [vmem:[%s3581_s1 + $0x32] ss:$0 sm:$0xff]  ;;  %v623_v29 = vmul.f32 %v2723_v26, %v2798_v63  ;;  %v2196_v26 = vld [vmem:[%s3581_s1 + $0x34] ss:$0 sm:$0xff] }
  0xe1   : > { %v2734_v30 = vpop.permute.xlu2 %702 }
  0xe2   : > { %v2736_v31 = vpop.permute.xlu1 %566  ;;  %v2738_v32 = vpop.permute.xlu0 %562 }
  0xe7   : > { %942 = vperm.xlu2 %2109, %v2176_v33  }
  0xe8   : > { %938 = vperm.xlu1 %2108, %v2177_v34   ;;  %934 = vperm.xlu0 %2107, %v2178_v35  }
  0xe9   : > { %v2749_v36 = vpop.permute.xlu2 %714 }
  0xea   : > { %v2751_v37 = vpop.permute.xlu1 %578  ;;  %v2753_v38 = vpop.permute.xlu0 %574 }
  0xef   : > { %954 = vperm.xlu2 %2109, %v2179_v39  }
  0xf0   : > { %950 = vperm.xlu1 %2108, %v2180_v41   ;;  %946 = vperm.xlu0 %2107, %v2181_v42   ;;  %v2194_v41 = vld [vmem:[%s3581_s1 + $0x36] ss:$0 sm:$0xff]  ;;  %v2195_v42 = vld [vmem:[%s3581_s1 + $0x35] ss:$0 sm:$0xff] }
  0xf1   : > { %v2764_v43 = vpop.permute.xlu2 %726 }
  0xf2   : > { %v2766_v45 = vpop.permute.xlu1 %590  ;;  %v2768_v46 = vpop.permute.xlu0 %586 }
  0xf7   : > { %966 = vperm.xlu2 %2109, %v2182_v47   ;;  %v626_v47 = vmul.f32 %v2738_v32, %v2798_v63  ;;  %v2199_v32 = vld [vmem:[%s3581_s1 + $0x37] ss:$0 sm:$0xff] }
  0xf8   : > { %962 = vperm.xlu1 %2108, %v2183_v49   ;;  %958 = vperm.xlu0 %2107, %v2184_v50  }
  0xf9   : > { %v2780_v51 = vpop.permute.xlu2 %738 }
  0xfa   : > { %v2782_v55 = vpop.permute.xlu1 %602  ;;  %v2784_v56 = vpop.permute.xlu0 %598 }
  0xff   : > { %978 = vperm.xlu2 %2109, %v2185_v57  }
 0x100   : > { %974 = vperm.xlu1 %2108, %v2186_v61   ;;  %970 = vperm.xlu0 %2107, %v2187_v62   ;;  %v2197_v62 = vld [vmem:[%s3581_s1 + $0x39] ss:$0 sm:$0xff] }
 0x101   : > { %v751_v4 = vpop.permute.xlu2 %750 }
 0x102   : > { %v2802_v5 = vadd.f32 %v751_v4, %v617_v3  ;;  %v2804_v9 = vpop.permute.xlu1 %710  ;;  %v2806_v10 = vpop.permute.xlu0 %706  ;;  %v2198_v3 = vld [vmem:[%s3581_s1 + $0x38] ss:$0 sm:$0xff]  ;;  %v629_v4 = vmul.f32 %v2753_v38, %v2798_v63  ;;  %v2201_v38 = vld [vmem:[%s3581_s1 + $0x3b] ss:$0 sm:$0xff] }
 0x107   : > { %990 = vperm.xlu2 %2109, %v2188_v11  }
 0x108   : > { %986 = vperm.xlu1 %2108, %v2189_v15   ;;  %982 = vperm.xlu0 %2107, %v2190_v14   ;;  %v618_v15 = vmul.f32 %v2691_v13, %v2798_v63  ;;  %v632_v13 = vmul.f32 %v2768_v46, %v2798_v63 }
 0x109   : > { %v763_v17 = vpop.permute.xlu2 %762 }
 0x10a   : > { %v2819_v21 = vadd.f32 %v763_v17, %v620_v16  ;;  %v2821_v22 = vpop.permute.xlu1 %722  ;;  %v2823_v23 = vpop.permute.xlu0 %718 }
 0x10f   : > { %1002 = vperm.xlu2 %2109, %v2191_v27   ;;  %v2200_v27 = vld [vmem:[%s3581_s1 + $0x3c] ss:$0 sm:$0xff] }
 0x110   : > { %998 = vperm.xlu1 %2108, %v2192_v28   ;;  %994 = vperm.xlu0 %2107, %v2193_v20   ;;  %v2202_v20 = vld [vmem:[%s3581_s1 + $0x3a] ss:$0 sm:$0xff] }
 0x111   : > { %v775_v33 = vpop.permute.xlu2 %774 }
 0x112   : > { %v2836_v34 = vadd.f32 %v775_v33, %v623_v29  ;;  %v2838_v35 = vpop.permute.xlu1 %734  ;;  %v2840_v39 = vpop.permute.xlu0 %730  ;;  %v622_v29 = vmul.f32 %v2659_v0, %v2798_v63  ;;  %v2204_v0 = vld [vmem:[%s3581_s1 + $0x3e] ss:$0 sm:$0xff] }
 0x117   : > { %1014 = vperm.xlu2 %2109, %v2194_v41   ;;  %v621_v41 = vmul.f32 %v2706_v19, %v2798_v63  ;;  %v2205_v19 = vld [vmem:[%s3581_s1 + $0x3d] ss:$0 sm:$0xff] }
 0x118   : > { %1010 = vperm.xlu1 %2108, %v2195_v42   ;;  %1006 = vperm.xlu0 %2107, %v2196_v26  }
 0x119   : > { %v787_v49 = vpop.permute.xlu2 %786 }
 0x11a   : > { %v2853_v50 = vadd.f32 %v787_v49, %v626_v47  ;;  %v2855_v57 = vpop.permute.xlu1 %746  ;;  %v2857_v61 = vpop.permute.xlu0 %742 }
 0x11f   : > { %1026 = vperm.xlu2 %2109, %v2197_v62   ;;  %v2203_v62 = vld [vmem:[%s3581_s1 + $0x3f] ss:$0 sm:$0xff] }
 0x120   : > { %1022 = vperm.xlu1 %2108, %v2198_v3   ;;  %1018 = vperm.xlu0 %2107, %v2199_v32   ;;  %v635_v3 = vmul.f32 %v2784_v56, %v2798_v63  ;;  %v625_v32 = vmul.f32 %v2674_v6, %v2798_v63  ;;  %v2207_v6 = vld [vmem:[%s3581_s1 + $0x41] ss:$0 sm:$0xff] }
 0x121   : > { %v799_v11 = vpop.permute.xlu2 %798 }
 0x122   : > { %v2872_v14 = vadd.f32 %v799_v11, %v629_v4  ;;  %v2874_v16 = vpop.permute.xlu1 %758  ;;  %v755_v17 = vpop.permute.xlu0 %754  ;;  %v624_v11 = vmul.f32 %v2721_v25, %v2798_v63  ;;  %v2208_v25 = vld [vmem:[%s3581_s1 + $0x40] ss:$0 sm:$0xff] }
 0x123   : > { %v2879_v28 = vadd.f32 %v755_v17, %v618_v15 }
 0x127   : > { %1038 = vperm.xlu2 %2109, %v2200_v27  }
 0x128   : > { %1034 = vperm.xlu1 %2108, %v2201_v38   ;;  %1030 = vperm.xlu0 %2107, %v2202_v20   ;;  %v2206_v20 = vld [vmem:[%s3581_s1 + $0x42] ss:$0 sm:$0xff] }
 0x129   : > { %v811_v33 = vpop.permute.xlu2 %810 }
 0x12a   : > { %v2893_v42 = vadd.f32 %v811_v33, %v632_v13  ;;  %v771_v26 = vpop.permute.xlu1 %770  ;;  %v767_v49 = vpop.permute.xlu0 %766  ;;  %v2930_v13 = vld [vmem:[%s2795_s13 + $0x8] sm:$0xff]  ;;  %v628_v33 = vmul.f32 %v2689_v12, %v2798_v63 }
 0x12b   : > { %v2895_v47 = vadd.f32 %v771_v26, %v622_v29  ;;  %v2900_v46 = vadd.f32 %v767_v49, %v621_v41  ;;  %v606_v29 = vmul.f32 %v2648_v60, %v2798_v63  ;;  %v627_v26 = vmul.f32 %v2736_v31, %v2798_v63  ;;  %v2209_v60 = vld [vmem:[%s3581_s1 + $0x45] ss:$0 sm:$0xff]  ;;  %v2210_v31 = vld [vmem:[%s3581_s1 + $0x44] ss:$0 sm:$0xff] }
 0x12d   : > { %v830_v49 = vadd.f32 %v2806_v10, %v606_v29  ;;  %v2211_v10 = vld [vmem:[%s3581_s1 + $0x43] ss:$0 sm:$0xff] }
 0x12f   : > { %1050 = vperm.xlu2 %2109, %v2203_v62  }
 0x130   : > { %1046 = vperm.xlu1 %2108, %v2204_v0   ;;  %1042 = vperm.xlu0 %2107, %v2205_v19  }
 0x131   : > { %v823_v4 = vpop.permute.xlu2 %822 }
 0x132   : > { %v2914_v15 = vadd.f32 %v823_v4, %v635_v3  ;;  %v783_v17 = vpop.permute.xlu1 %782  ;;  %v779_v38 = vpop.permute.xlu0 %778  ;;  %v609_v4 = vmul.f32 %v2596_v40, %v2798_v63  ;;  %v2212_v40 = vld [vmem:[%s3581_s1 + $0x48] ss:$0 sm:$0xff] }
 0x133   : > { %v2916_v27 = vadd.f32 %v783_v17, %v625_v32  ;;  %v2921_v56 = vadd.f32 %v779_v38, %v624_v11  ;;  %v631_v11 = vmul.f32 %v2704_v18, %v2798_v63  ;;  %v630_v38 = vmul.f32 %v2751_v37, %v2798_v63  ;;  %v2213_v37 = vld [vmem:[%s3581_s1 + $0x47] ss:$0 sm:$0xff] }
 0x137   : > { %1190 = vperm.xlu2 %2109, %v2206_v20   ;;  %v833_v20 = vadd.f32 %v2823_v23, %v609_v4  ;;  %v2214_v23 = vld [vmem:[%s3581_s1 + $0x46] ss:$0 sm:$0xff] }
 0x138   : > { %1186 = vperm.xlu1 %2108, %v2207_v6   ;;  %1182 = vperm.xlu0 %2107, %v2208_v25  }
 0x139   : > { %v931_v41 = vpop.permute.xlu2 %930 }
 0x13a   : > { %v1054_v62 = vmul.f32 %v931_v41, %v2930_v13  ;;  %v795_v0 = vpop.permute.xlu1 %794  ;;  %v791_v3 = vpop.permute.xlu0 %790 }
 0x13b   : > { %v2940_v19 = vadd.f32 %v795_v0, %v628_v33  ;;  %v2947_v12 = vadd.f32 %v791_v3, %v627_v26  ;;  %v612_v26 = vmul.f32 %v2661_v1, %v2798_v63  ;;  %v633_v0 = vmul.f32 %v2766_v45, %v2798_v63  ;;  %v2215_v1 = vld [vmem:[%s3581_s1 + $0x4b] ss:$0 sm:$0xff]  ;;  %v2216_v45 = vld [vmem:[%s3581_s1 + $0x4a] ss:$0 sm:$0xff] }
 0x13c   : > { %v2945_v32 = vadd.f32 %v1054_v62, %v830_v49  ;;  %v634_v49 = vmul.f32 %v2719_v24, %v2798_v63 }
 0x13d   : > { %v836_v3 = vadd.f32 %v2840_v39, %v612_v26  ;;  %v2217_v39 = vld [vmem:[%s3581_s1 + $0x49] ss:$0 sm:$0xff] }
 0x13f   : > { %1202 = vperm.xlu2 %2109, %v2209_v60  }
 0x140   : > { %1198 = vperm.xlu1 %2108, %v2210_v31   ;;  %1194 = vperm.xlu0 %2107, %v2211_v10  }
 0x141   : > { %v943_v17 = vpop.permute.xlu2 %942 }
 0x142   : > { %v1057_v6 = vmul.f32 %v943_v17, %v2930_v13  ;;  %v807_v25 = vpop.permute.xlu1 %806  ;;  %v803_v33 = vpop.permute.xlu0 %802  ;;  %v615_v17 = vmul.f32 %v2676_v7, %v2798_v63  ;;  %v2218_v7 = vld [vmem:[%s3581_s1 + $0x4e] ss:$0 sm:$0xff] }
 0x143   : > { %v2963_v29 = vadd.f32 %v807_v25, %v631_v11  ;;  %v2970_v18 = vadd.f32 %v803_v33, %v630_v38  ;;  %v605_v38 = vmul.f32 %v2633_v54, %v2798_v63 }
 0x144   : > { %v2968_v41 = vadd.f32 %v1057_v6, %v833_v20  ;;  %v636_v6 = vmul.f32 %v2782_v55, %v2798_v63  ;;  %v839_v25 = vadd.f32 %v2857_v61, %v615_v17  ;;  %v2219_v55 = vld [vmem:[%s3581_s1 + $0x4d] ss:$0 sm:$0xff] }
 0x147   : > { %1214 = vperm.xlu2 %2109, %v2212_v40  }
 0x148   : > { %1210 = vperm.xlu1 %2108, %v2213_v37   ;;  %1206 = vperm.xlu0 %2107, %v2214_v23   ;;  %v829_v37 = vadd.f32 %v2734_v30, %v605_v38  ;;  %v2220_v30 = vld [vmem:[%s3581_s1 + $0x4c] ss:$0 sm:$0xff] }
 0x149   : > { %v955_v62 = vpop.permute.xlu2 %954 }
 0x14a   : > { %v1060_v60 = vmul.f32 %v955_v62, %v2930_v13  ;;  %v819_v31 = vpop.permute.xlu1 %818  ;;  %v815_v4 = vpop.permute.xlu0 %814  ;;  %v608_v62 = vmul.f32 %v2646_v59, %v2798_v63 }
 0x14b   : > { %v2986_v10 = vadd.f32 %v819_v31, %v634_v49  ;;  %v2993_v24 = vadd.f32 %v815_v4, %v633_v0 }
 0x14c   : > { %v2991_v11 = vadd.f32 %v1060_v60, %v836_v3  ;;  %v607_v3 = vmul.f32 %v2631_v53, %v2798_v63  ;;  %v832_v4 = vadd.f32 %v2749_v36, %v608_v62  ;;  %v2222_v53 = vld [vmem:[%s3581_s1 + $0x50] ss:$0 sm:$0xff]  ;;  %v2223_v36 = vld [vmem:[%s3581_s1 + $0x4f] ss:$0 sm:$0xff] }
 0x14e   : > { %v831_v17 = vadd.f32 %v2804_v9, %v607_v3  ;;  %v611_v9 = vmul.f32 %v2663_v2, %v2798_v63  ;;  %v613_v3 = vmul.f32 %v2618_v48, %v2798_v63  ;;  %v2228_v48 = vld [vmem:[%s3581_s1 + $0x56] ss:$0 sm:$0xff] }
 0x14f   : > { %1226 = vperm.xlu2 %2109, %v2215_v1  }
 0x150   : > { %1222 = vperm.xlu1 %2108, %v2216_v45   ;;  %1218 = vperm.xlu0 %2107, %v2217_v39   ;;  %v2221_v39 = vld [vmem:[%s3581_s1 + $0x51] ss:$0 sm:$0xff] }
 0x151   : > { %v967_v20 = vpop.permute.xlu2 %966 }
 0x152   : > { %v1063_v33 = vmul.f32 %v967_v20, %v2930_v13  ;;  %v927_v40 = vpop.permute.xlu1 %926  ;;  %v827_v26 = vpop.permute.xlu0 %826 }
 0x153   : > { %v1053_v23 = vmul.f32 %v927_v40, %v2930_v13  ;;  %v3016_v49 = vadd.f32 %v827_v26, %v636_v6 }
 0x154   : > { %v3014_v54 = vadd.f32 %v1063_v33, %v839_v25  ;;  %v610_v25 = vmul.f32 %v2607_v44, %v2798_v63  ;;  %v2225_v44 = vld [vmem:[%s3581_s1 + $0x53] ss:$0 sm:$0xff] }
 0x155   : > { %v3021_v61 = vadd.f32 %v1053_v23, %v829_v37  ;;  %v835_v37 = vadd.f32 %v2764_v43, %v611_v9  ;;  %v2226_v43 = vld [vmem:[%s3581_s1 + $0x52] ss:$0 sm:$0xff] }
 0x157   : > { %1238 = vperm.xlu2 %2109, %v2218_v7   ;;  %v2224_v7 = vld [vmem:[%s3581_s1 + $0x54] ss:$0 sm:$0xff] }
 0x158   : > { %1234 = vperm.xlu1 %2108, %v2219_v55   ;;  %1230 = vperm.xlu0 %2107, %v2220_v30   ;;  %v834_v55 = vadd.f32 %v2821_v22, %v610_v25  ;;  %v614_v22 = vmul.f32 %v2678_v8, %v2798_v63 }
 0x159   : > { %v979_v0 = vpop.permute.xlu2 %978 }
 0x15a   : > { %v1066_v60 = vmul.f32 %v979_v0, %v2930_v13  ;;  %v939_v31 = vpop.permute.xlu1 %938  ;;  %v935_v45 = vpop.permute.xlu0 %934 }
 0x15b   : > { %v1056_v1 = vmul.f32 %v939_v31, %v2930_v13  ;;  %v1055_v38 = vmul.f32 %v935_v45, %v2930_v13 }
 0x15c   : > { %v3038_v59 = vadd.f32 %v1066_v60, %v2879_v28 }
 0x15d   : > { %v3044_v20 = vadd.f32 %v1056_v1, %v832_v4  ;;  %v3049_v6 = vadd.f32 %v1055_v38, %v831_v17  ;;  %v838_v4 = vadd.f32 %v2780_v51, %v614_v22  ;;  %v837_v17 = vadd.f32 %v2838_v35, %v613_v3  ;;  %v2229_v51 = vld [vmem:[%s3581_s1 + $0x55] ss:$0 sm:$0xff] }
 0x15f   : > { %1250 = vperm.xlu2 %2109, %v2221_v39   ;;  %v2227_v39 = vld [vmem:[%s3581_s1 + $0x57] ss:$0 sm:$0xff] }
 0x160   : > { %1246 = vperm.xlu1 %2108, %v2222_v53   ;;  %1242 = vperm.xlu0 %2107, %v2223_v36  }
 0x161   : > { %v991_v28 = vpop.permute.xlu2 %990 }
 0x162   : > { %v1069_v33 = vmul.f32 %v991_v28, %v2930_v13  ;;  %v951_v40 = vpop.permute.xlu1 %950  ;;  %v947_v26 = vpop.permute.xlu0 %946 }
 0x163   : > { %v1059_v23 = vmul.f32 %v951_v40, %v2930_v13  ;;  %v1058_v30 = vmul.f32 %v947_v26, %v2930_v13  ;;  %v2230_v40 = vld [vmem:[%s3581_s1 + $0x5a] ss:$0 sm:$0xff] }
 0x164   : > { %v3063_v2 = vadd.f32 %v1069_v33, %v2900_v46 }
 0x165   : > { %v3069_v62 = vadd.f32 %v1059_v23, %v835_v37  ;;  %v3074_v0 = vadd.f32 %v1058_v30, %v834_v55  ;;  %v2232_v55 = vld [vmem:[%s3581_s1 + $0x58] ss:$0 sm:$0xff] }
 0x167   : > { %1262 = vperm.xlu2 %2109, %v2224_v7  }
 0x168   : > { %1258 = vperm.xlu1 %2108, %v2225_v44   ;;  %1254 = vperm.xlu0 %2107, %v2226_v43  }
 0x169   : > { %v1003_v46 = vpop.permute.xlu2 %1002 }
 0x16a   : > { %v1072_v60 = vmul.f32 %v1003_v46, %v2930_v13  ;;  %v963_v31 = vpop.permute.xlu1 %962  ;;  %v959_v45 = vpop.permute.xlu0 %958  ;;  %v2233_v46 = vld [vmem:[%s3581_s1 + $0x5d] ss:$0 sm:$0xff] }
 0x16b   : > { %v1062_v1 = vmul.f32 %v963_v31, %v2930_v13  ;;  %v1061_v38 = vmul.f32 %v959_v45, %v2930_v13 }
 0x16c   : > { %v3088_v8 = vadd.f32 %v1072_v60, %v2921_v56  ;;  %v616_v56 = vmul.f32 %v2629_v52, %v2798_v63  ;;  %v2231_v52 = vld [vmem:[%s3581_s1 + $0x59] ss:$0 sm:$0xff] }
 0x16d   : > { %v3094_v53 = vadd.f32 %v1062_v1, %v838_v4  ;;  %v3099_v36 = vadd.f32 %v1061_v38, %v837_v17  ;;  %v2235_v4 = vld [vmem:[%s3581_s1 + $0x5b] ss:$0 sm:$0xff] }
 0x16e   : > { %v840_v37 = vadd.f32 %v2855_v57, %v616_v56 }
 0x16f   : > { %1274 = vperm.xlu2 %2109, %v2227_v39  }
 0x170   : > { %1270 = vperm.xlu1 %2108, %v2228_v48   ;;  %1266 = vperm.xlu0 %2107, %v2229_v51   ;;  %v2236_v48 = vld [vmem:[%s3581_s1 + $0x5f] ss:$0 sm:$0xff] }
 0x171   : > { %v1015_v35 = vpop.permute.xlu2 %1014 }
 0x172   : > { %v1075_v9 = vmul.f32 %v1015_v35, %v2930_v13  ;;  %v975_v28 = vpop.permute.xlu1 %974  ;;  %v971_v33 = vpop.permute.xlu0 %970  ;;  %v2237_v35 = vld [vmem:[%s3581_s1 + $0x5e] ss:$0 sm:$0xff] }
 0x173   : > { %v1065_v25 = vmul.f32 %v975_v28, %v2930_v13  ;;  %v1064_v26 = vmul.f32 %v971_v33, %v2930_v13 }
 0x174   : > { %v3110_v23 = vadd.f32 %v1075_v9, %v2947_v12  ;;  %v619_v12 = vmul.f32 %v2644_v58, %v2798_v63  ;;  %v2234_v58 = vld [vmem:[%s3581_s1 + $0x5c] ss:$0 sm:$0xff] }
 0x175   : > { %v3117_v7 = vadd.f32 %v1065_v25, %v2802_v5  ;;  %v3122_v30 = vadd.f32 %v1064_v26, %v840_v37 }
 0x176   : > { %v843_v3 = vadd.f32 %v2874_v16, %v619_v12 }
 0x177   : > { %1286 = vperm.xlu2 %2109, %v2230_v40  }
 0x178   : > { %1282 = vperm.xlu1 %2108, %v2231_v52   ;;  %1278 = vperm.xlu0 %2107, %v2232_v55  }
 0x179   : > { %v1027_v57 = vpop.permute.xlu2 %1026 }
 0x17a   : > { %v1078_v44 = vmul.f32 %v1027_v57, %v2930_v13  ;;  %v987_v43 = vpop.permute.xlu1 %986  ;;  %v983_v5 = vpop.permute.xlu0 %982 }
 0x17b   : > { %v1068_v22 = vmul.f32 %v987_v43, %v2930_v13  ;;  %v1067_v31 = vmul.f32 %v983_v5, %v2930_v13 }
 0x17c   : > { %v3133_v60 = vadd.f32 %v1078_v44, %v2970_v18 }
 0x17d   : > { %v3140_v63 = vadd.f32 %v1068_v22, %v2819_v21  ;;  %v3145_v1 = vadd.f32 %v1067_v31, %v843_v3 }
 0x17f   : > { %1298 = vperm.xlu2 %2109, %v2233_v46  }
 0x180   : > { %1294 = vperm.xlu1 %2108, %v2234_v58   ;;  %1290 = vperm.xlu0 %2107, %v2235_v4   ;;  %v3196_v4 = vld [vmem:[%s2795_s13 + $0x10] sm:$0xff]  ;;  %s279_s13 = sand.u32 1, %s2320_s19  }
 0x181   : > { %v1039_v16 = vpop.permute.xlu2 %1038  ;;  %s3268_s10 = sshll.u32 %s279_s13, 3 }
 0x182   : > { %v1081_v18 = vmul.f32 %v1039_v16, %v2930_v13  ;;  %v999_v45 = vpop.permute.xlu1 %998  ;;  %v995_v17 = vpop.permute.xlu0 %994  ;;  %s281_s7 = scalar_lea.vmem [#allocation4], %s3268_s10 }
 0x183   : > { %v1071_v39 = vmul.f32 %v999_v45, %v2930_v13  ;;  %v1070_v21 = vmul.f32 %v995_v17, %v2930_v13 }
 0x184   : > { %v3150_v38 = vadd.f32 %v1081_v18, %v2993_v24 }
 0x185   : > { %v3157_v51 = vadd.f32 %v1071_v39, %v2836_v34  ;;  %v3163_v56 = vadd.f32 %v1070_v21, %v2895_v47 }
 0x188   : > { %1306 = vperm.xlu1 %2108, %v2236_v48   ;;  %1302 = vperm.xlu0 %2107, %v2237_v35  }
 0x189   : > { %v1051_v24 = vpop.permute.xlu2 %1050 }
 0x18a   : > { %v1084_v9 = vmul.f32 %v1051_v24, %v2930_v13  ;;  %v1011_v28 = vpop.permute.xlu1 %1010  ;;  %v1007_v33 = vpop.permute.xlu0 %1006 }
 0x18b   : > { %v1074_v25 = vmul.f32 %v1011_v28, %v2930_v13  ;;  %v1073_v34 = vmul.f32 %v1007_v33, %v2930_v13 }
 0x18c   : > { %v3168_v40 = vadd.f32 %v1084_v9, %v3016_v49 }
 0x18d   : > { %v3172_v37 = vadd.f32 %v1074_v25, %v2853_v50  ;;  %v3175_v47 = vadd.f32 %v1073_v34, %v2916_v27 }
 0x191   : > { %v1191_v57 = vpop.permute.xlu2 %1190 }
 0x192   : > { %v1023_v26 = vpop.permute.xlu1 %1022  ;;  %v1019_v55 = vpop.permute.xlu0 %1018 }
 0x193   : > { %v1077_v52 = vmul.f32 %v1023_v26, %v2930_v13  ;;  %v1076_v12 = vmul.f32 %v1019_v55, %v2930_v13 }
 0x195   : > { %v3180_v44 = vadd.f32 %v1077_v52, %v2872_v14  ;;  %v3183_v49 = vadd.f32 %v1076_v12, %v2940_v19 }
 0x199   : > { %v1203_v46 = vpop.permute.xlu2 %1202 }
 0x19a   : > { %v1035_v43 = vpop.permute.xlu1 %1034  ;;  %v1031_v22 = vpop.permute.xlu0 %1030 }
 0x19b   : > { %v1080_v50 = vmul.f32 %v1035_v43, %v2930_v13  ;;  %v1079_v27 = vmul.f32 %v1031_v22, %v2930_v13 }
 0x19d   : > { %v3188_v5 = vadd.f32 %v1080_v50, %v2893_v42  ;;  %v3191_v3 = vadd.f32 %v1079_v27, %v2963_v29  ;;  %v1311_v42 = vmul.f32 %v1191_v57, %v3196_v4 }
 0x19f   : > { %v1343_v48 = vadd.f32 %v1311_v42, %v3049_v6 }
 0x1a1   : > { %v1215_v45 = vpop.permute.xlu2 %1214  ;;  %v1375_v9 = vmax.f32 %v1343_v48, 0.0 }
 0x1a2   : > { %v1047_v31 = vpop.permute.xlu1 %1046  ;;  %v1043_v58 = vpop.permute.xlu0 %1042  ;;  %v1317_v52 = vmul.f32 %v1215_v45, %v3196_v4 }
 0x1a3   : > { %v1083_v14 = vmul.f32 %v1047_v31, %v2930_v13  ;;  %v1082_v19 = vmul.f32 %v1043_v58, %v2930_v13 }
 0x1a4   : > { %v1349_v27 = vadd.f32 %v1317_v52, %v3099_v36 }
 0x1a5   : > { %v3199_v16 = vadd.f32 %v1083_v14, %v2914_v15  ;;  %v3202_v18 = vadd.f32 %v1082_v19, %v2986_v10  ;;  %v1314_v10 = vmul.f32 %v1203_v46, %v3196_v4 }
 0x1a6   : > { %v1381_v58 = vmax.f32 %v1349_v27, 0.0 }
 0x1a7   : > { %v1346_v26 = vadd.f32 %v1314_v10, %v3074_v0 }
 0x1a9   : > { %v1227_v28 = vpop.permute.xlu2 %1226  ;;  %v1378_v55 = vmax.f32 %v1346_v26, 0.0 }
 0x1aa   : > { %v1187_v39 = vpop.permute.xlu1 %1186  ;;  %v1183_v17 = vpop.permute.xlu0 %1182  ;;  %v1320_v14 = vmul.f32 %v1227_v28, %v3196_v4 }
 0x1ab   : > { %v1310_v29 = vmul.f32 %v1187_v39, %v3196_v4  ;;  %v1309_v21 = vmul.f32 %v1183_v17, %v3196_v4 }
 0x1ac   : > { %v1352_v36 = vadd.f32 %v1320_v14, %v3122_v30 }
 0x1ad   : > { %v1342_v13 = vadd.f32 %v1310_v29, %v2945_v32  ;;  %v1341_v35 = vadd.f32 %v1309_v21, %v3021_v61 }
 0x1af   : > { %v1374_v15 = vmax.f32 %v1342_v13, 0.0  ;;  %v1373_v24 = vmax.f32 %v1341_v35, 0.0  ;;  %v1384_v13 = vmax.f32 %v1352_v36, 0.0 }
 0x1b1   : > { %1405 = vadd.xlane.f32.xlu2 %v1373_v24  ;;  %v1239_v43 = vpop.permute.xlu2 %1238 }
 0x1b2   : > { %v1199_v25 = vpop.permute.xlu1 %1198  ;;  %1409 = vadd.xlane.f32.xlu1 %v1375_v9  ;;  %v1195_v33 = vpop.permute.xlu0 %1194  ;;  %1407 = vadd.xlane.f32.xlu0 %v1374_v15  ;;  %v1323_v48 = vmul.f32 %v1239_v43, %v3196_v4 }
 0x1b3   : > { %v1312_v34 = vmul.f32 %v1195_v33, %v3196_v4  ;;  %v1313_v32 = vmul.f32 %v1199_v25, %v3196_v4 }
 0x1b4   : > { %v1355_v30 = vadd.f32 %v1323_v48, %v3145_v1 }
 0x1b5   : > { %v1344_v6 = vadd.f32 %v1312_v34, %v3044_v20  ;;  %v1345_v22 = vadd.f32 %v1313_v32, %v2968_v41 }
 0x1b6   : > { %v1387_v34 = vmax.f32 %v1355_v30, 0.0 }
 0x1b7   : > { %v1376_v61 = vmax.f32 %v1344_v6, 0.0  ;;  %v1377_v31 = vmax.f32 %v1345_v22, 0.0 }
 0x1b9   : > { %1411 = vadd.xlane.f32.xlu2 %v1376_v61  ;;  %v1251_v39 = vpop.permute.xlu2 %1250 }
 0x1ba   : > { %v1211_v57 = vpop.permute.xlu1 %1210  ;;  %v1207_v12 = vpop.permute.xlu0 %1206  ;;  %1415 = vadd.xlane.f32.xlu0 %v1378_v55  ;;  %v1326_v33 = vmul.f32 %v1251_v39, %v3196_v4 }
 0x1bb   : > { %v1315_v50 = vmul.f32 %v1207_v12, %v3196_v4  ;;  %v1316_v20 = vmul.f32 %v1211_v57, %v3196_v4 }
 0x1bc   : > { %v1358_v1 = vadd.f32 %v1326_v33, %v3163_v56 }
 0x1bd   : > { %v1347_v0 = vadd.f32 %v1315_v50, %v3069_v62  ;;  %v1348_v41 = vadd.f32 %v1316_v20, %v2991_v11 }
 0x1be   : > { %v1390_v12 = vmax.f32 %v1358_v1, 0.0 }
 0x1bf   : > { %v1379_v46 = vmax.f32 %v1347_v0, 0.0  ;;  %v1380_v21 = vmax.f32 %v1348_v41, 0.0 }
 0x1c1   : > { %1417 = vadd.xlane.f32.xlu1 %v1379_v46  ;;  %1413 = vadd.xlane.f32.xlu2 %v1377_v31  ;;  %v1263_v9 = vpop.permute.xlu2 %1262 }
 0x1c2   : > { %v1223_v19 = vpop.permute.xlu1 %1222  ;;  %v1219_v42 = vpop.permute.xlu0 %1218  ;;  %1421 = vadd.xlane.f32.xlu0 %v1381_v58  ;;  %v1329_v57 = vmul.f32 %v1263_v9, %v3196_v4 }
 0x1c3   : > { %v1318_v45 = vmul.f32 %v1219_v42, %v3196_v4  ;;  %v1319_v29 = vmul.f32 %v1223_v19, %v3196_v4 }
 0x1c4   : > { %v1361_v56 = vadd.f32 %v1329_v57, %v3175_v47 }
 0x1c5   : > { %v1350_v62 = vadd.f32 %v1318_v45, %v3094_v53  ;;  %v1351_v11 = vadd.f32 %v1319_v29, %v3014_v54 }
 0x1c6   : > { %v1393_v31 = vmax.f32 %v1361_v56, 0.0 }
 0x1c7   : > { %v1382_v17 = vmax.f32 %v1350_v62, 0.0  ;;  %v1383_v25 = vmax.f32 %v1351_v11, 0.0 }
 0x1c9   : > { %1423 = vadd.xlane.f32.xlu1 %v1382_v17  ;;  %1419 = vadd.xlane.f32.xlu2 %v1380_v21  ;;  %v1275_v43 = vpop.permute.xlu2 %1274 }
 0x1ca   : > { %v1235_v35 = vpop.permute.xlu1 %1234  ;;  %v1231_v15 = vpop.permute.xlu0 %1230  ;;  %1427 = vadd.xlane.f32.xlu0 %v1384_v13  ;;  %v1332_v14 = vmul.f32 %v1275_v43, %v3196_v4 }
 0x1cb   : > { %v1321_v24 = vmul.f32 %v1231_v15, %v3196_v4  ;;  %v1322_v10 = vmul.f32 %v1235_v35, %v3196_v4 }
 0x1cc   : > { %v1364_v47 = vadd.f32 %v1332_v14, %v3183_v49 }
 0x1cd   : > { %v1353_v53 = vadd.f32 %v1321_v24, %v3117_v7  ;;  %v1354_v54 = vadd.f32 %v1322_v10, %v3038_v59 }
 0x1ce   : > { %v1396_v62 = vmax.f32 %v1364_v47, 0.0 }
 0x1cf   : > { %v1385_v28 = vmax.f32 %v1353_v53, 0.0  ;;  %v1386_v55 = vmax.f32 %v1354_v54, 0.0 }
 0x1d1   : > { %1429 = vadd.xlane.f32.xlu1 %v1385_v28  ;;  %1425 = vadd.xlane.f32.xlu2 %v1383_v25  ;;  %v1287_v42 = vpop.permute.xlu2 %1286 }
 0x1d2   : > { %v1247_v26 = vpop.permute.xlu1 %1246  ;;  %v1243_v6 = vpop.permute.xlu0 %1242  ;;  %1433 = vadd.xlane.f32.xlu0 %v1387_v34  ;;  %v1335_v29 = vmul.f32 %v1287_v42, %v3196_v4 }
 0x1d3   : > { %v1324_v32 = vmul.f32 %v1243_v6, %v3196_v4  ;;  %v1325_v61 = vmul.f32 %v1247_v26, %v3196_v4 }
 0x1d4   : > { %v1367_v49 = vadd.f32 %v1335_v29, %v3191_v3 }
 0x1d5   : > { %v1356_v7 = vadd.f32 %v1324_v32, %v3140_v63  ;;  %v1357_v59 = vadd.f32 %v1325_v61, %v3063_v2 }
 0x1d6   : > { %v1399_v11 = vmax.f32 %v1367_v49, 0.0 }
 0x1d7   : > { %v1388_v52 = vmax.f32 %v1356_v7, 0.0  ;;  %v1389_v46 = vmax.f32 %v1357_v59, 0.0 }
 0x1d9   : > { %1435 = vadd.xlane.f32.xlu1 %v1388_v52  ;;  %1431 = vadd.xlane.f32.xlu2 %v1386_v55  ;;  %v1299_v13 = vpop.permute.xlu2 %1298 }
 0x1da   : > { %v1259_v50 = vpop.permute.xlu1 %1258  ;;  %v1255_v22 = vpop.permute.xlu0 %1254  ;;  %1439 = vadd.xlane.f32.xlu0 %v1390_v12  ;;  %v1338_v30 = vmul.f32 %v1299_v13, %v3196_v4 }
 0x1db   : > { %v1327_v27 = vmul.f32 %v1255_v22, %v3196_v4  ;;  %v1328_v0 = vmul.f32 %v1259_v50, %v3196_v4 }
 0x1dd   : > { %v1359_v63 = vadd.f32 %v1327_v27, %v3157_v51  ;;  %v1360_v45 = vadd.f32 %v1328_v0, %v3088_v8 }
 0x1df   : > { %v1391_v20 = vmax.f32 %v1359_v63, 0.0  ;;  %v1392_v41 = vmax.f32 %v1360_v45, 0.0 }
 0x1e1   : > { %1441 = vadd.xlane.f32.xlu1 %v1391_v20  ;;  %1437 = vadd.xlane.f32.xlu2 %v1389_v46 }
 0x1e2   : > { %v1271_v58 = vpop.permute.xlu1 %1270  ;;  %v1267_v19 = vpop.permute.xlu0 %1266  ;;  %1445 = vadd.xlane.f32.xlu0 %v1393_v31 }
 0x1e3   : > { %v1330_v2 = vmul.f32 %v1267_v19, %v3196_v4  ;;  %v1331_v36 = vmul.f32 %v1271_v58, %v3196_v4 }
 0x1e5   : > { %v1362_v51 = vadd.f32 %v1330_v2, %v3172_v37  ;;  %v1363_v8 = vadd.f32 %v1331_v36, %v3110_v23 }
 0x1e7   : > { %v1394_v39 = vmax.f32 %v1362_v51, 0.0  ;;  %v1395_v35 = vmax.f32 %v1363_v8, 0.0 }
 0x1e9   : > { %1447 = vadd.xlane.f32.xlu1 %v1394_v39  ;;  %1443 = vadd.xlane.f32.xlu2 %v1392_v41 }
 0x1ea   : > { %v1283_v17 = vpop.permute.xlu1 %1282  ;;  %v1279_v21 = vpop.permute.xlu0 %1278  ;;  %1451 = vadd.xlane.f32.xlu0 %v1396_v62 }
 0x1eb   : > { %v1333_v48 = vmul.f32 %v1279_v21, %v3196_v4  ;;  %v1334_v15 = vmul.f32 %v1283_v17, %v3196_v4 }
 0x1ed   : > { %v1365_v37 = vadd.f32 %v1333_v48, %v3180_v44  ;;  %v1366_v23 = vadd.f32 %v1334_v15, %v3133_v60  ;;  %v1370_v44 = vadd.f32 %v1338_v30, %v3202_v18 }
 0x1ef   : > { %v1397_v24 = vmax.f32 %v1365_v37, 0.0  ;;  %v1398_v28 = vmax.f32 %v1366_v23, 0.0  ;;  %v1402_v34 = vmax.f32 %v1370_v44, 0.0 }
 0x1f1   : > { %1453 = vadd.xlane.f32.xlu1 %v1397_v24  ;;  %1449 = vadd.xlane.f32.xlu2 %v1395_v35 }
 0x1f2   : > { %v1295_v53 = vpop.permute.xlu1 %1294  ;;  %v1291_v9 = vpop.permute.xlu0 %1290  ;;  %1457 = vadd.xlane.f32.xlu0 %v1399_v11 }
 0x1f3   : > { %v1336_v3 = vmul.f32 %v1291_v9, %v3196_v4  ;;  %v1337_v25 = vmul.f32 %v1295_v53, %v3196_v4 }
 0x1f5   : > { %v1368_v10 = vadd.f32 %v1336_v3, %v3188_v5  ;;  %v1369_v6 = vadd.f32 %v1337_v25, %v3150_v38 }
 0x1f7   : > { %v1400_v33 = vmax.f32 %v1368_v10, 0.0  ;;  %v1401_v32 = vmax.f32 %v1369_v6, 0.0 }
 0x1f9   : > { %1459 = vadd.xlane.f32.xlu1 %v1400_v33  ;;  %1455 = vadd.xlane.f32.xlu2 %v1398_v28 }
 0x1fa   : > { %v1303_v26 = vpop.permute.xlu0 %1302  ;;  %1463 = vadd.xlane.f32.xlu0 %v1402_v34  ;;  %v1307_v18 = vpop.permute.xlu1 %1306 }
 0x1fb   : > { %v1339_v60 = vmul.f32 %v1303_v26, %v3196_v4  ;;  %v1340_v54 = vmul.f32 %v1307_v18, %v3196_v4 }
 0x1fd   : > { %v1371_v5 = vadd.f32 %v1339_v60, %v3199_v16  ;;  %v1372_v7 = vadd.f32 %v1340_v54, %v3168_v40 }
 0x1ff   : > { %v1403_v1 = vmax.f32 %v1371_v5, 0.0  ;;  %v1404_v61 = vmax.f32 %v1372_v7, 0.0 }
 0x201   : > { %1465 = vadd.xlane.f32.xlu1 %v1403_v1  ;;  %1461 = vadd.xlane.f32.xlu2 %v1401_v32 }
 0x209   : > { %1467 = vadd.xlane.f32.xlu2 %v1404_v61 }
 0x224   : > { %v3273_v52 = vpop.xlane.xlu2 %1405 }
 0x225   : > { %v3275_v38 = vpop.xlane.xlu1 %1409  ;;  %v3277_v55 = vpop.xlane.xlu0 %1407 }
 0x22c   : > { %v3279_v57 = vpop.xlane.xlu2 %1411 }
 0x22d   : > { %v3281_v12 = vpop.xlane.xlu0 %1415 }
 0x234   : > { %v3283_v16 = vpop.xlane.xlu1 %1417  ;;  %v3285_v4 = vpop.xlane.xlu2 %1413 }
 0x235   : > { %v3287_v43 = vpop.xlane.xlu0 %1421 }
 0x23c   : > { %v3289_v50 = vpop.xlane.xlu1 %1423  ;;  %v3291_v40 = vpop.xlane.xlu2 %1419 }
 0x23d   : > { %v3293_v22 = vpop.xlane.xlu0 %1427 }
 0x244   : > { %v3295_v27 = vpop.xlane.xlu1 %1429  ;;  %v3297_v59 = vpop.xlane.xlu2 %1425 }
 0x245   : > { %v3299_v56 = vpop.xlane.xlu0 %1433 }
 0x24c   : > { %v3301_v63 = vpop.xlane.xlu1 %1435  ;;  %v3303_v0 = vpop.xlane.xlu2 %1431 }
 0x24d   : > { %v3305_v20 = vpop.xlane.xlu0 %1439 }
 0x254   : > { %v3307_v46 = vpop.xlane.xlu1 %1441  ;;  %v3309_v31 = vpop.xlane.xlu2 %1437 }
 0x255   : > { %v3311_v14 = vpop.xlane.xlu0 %1445 }
 0x25c   : > { %v3313_v58 = vpop.xlane.xlu1 %1447  ;;  %v3315_v19 = vpop.xlane.xlu2 %1443 }
 0x25d   : > { %v3317_v42 = vpop.xlane.xlu0 %1451 }
 0x264   : > { %v3319_v45 = vpop.xlane.xlu1 %1453  ;;  %v3321_v2 = vpop.xlane.xlu2 %1449 }
 0x265   : > { %v3323_v47 = vpop.xlane.xlu0 %1457 }
 0x26c   : > { %v3325_v51 = vpop.xlane.xlu1 %1459  ;;  %v3327_v41 = vpop.xlane.xlu2 %1455 }
 0x26d   : > { %v3329_v36 = vpop.xlane.xlu0 %1463 }
 0x274   : > { %v3331_v39 = vpop.xlane.xlu1 %1465  ;;  %v3333_v62 = vpop.xlane.xlu2 %1461 }
 0x278   : > { %1472 = sbr.rel (%p2007_p3) target bundleno = 670 (0x29e), region = 82 }
 0x27c   : > { %v3335_v29 = vpop.xlane.xlu2 %1467 }
 0x27d   : > { %vm1473_vm0 = vcmask 7168   ;;  %v2355_v17 = vmov 0.0  }
 0x27e   : > { %1474 = vst.msk [vmem:[#allocation2] sm:$0xff] %vm1473_vm0, %v2355_v17 }
 0x27f   : > { %1475 = vst.msk [vmem:[#allocation2 + $0x8] sm:$0xff] %vm1473_vm0, %v2355_v17 }
 0x280   : > { %1476 = vst.msk [vmem:[#allocation2 + $0x10] sm:$0xff] %vm1473_vm0, %v2355_v17 }
 0x281   : > { %1477 = vst.msk [vmem:[#allocation2 + $0x18] sm:$0xff] %vm1473_vm0, %v2355_v17 }
 0x282   : > { %1478 = vst.msk [vmem:[#allocation2 + $0x20] sm:$0xff] %vm1473_vm0, %v2355_v17 }
 0x283   : > { %1479 = vst.msk [vmem:[#allocation2 + $0x28] sm:$0xff] %vm1473_vm0, %v2355_v17 }
 0x284   : > { %1480 = vst.msk [vmem:[#allocation2 + $0x30] sm:$0xff] %vm1473_vm0, %v2355_v17 }
 0x285   : > { %1481 = vst.msk [vmem:[#allocation2 + $0x38] sm:$0xff] %vm1473_vm0, %v2355_v17 }
 0x286   : > { %1482 = vst.msk [vmem:[#allocation2 + $0x40] sm:$0xff] %vm1473_vm0, %v2355_v17 }
 0x287   : > { %1483 = vst.msk [vmem:[#allocation2 + $0x48] sm:$0xff] %vm1473_vm0, %v2355_v17 }
 0x288   : > { %1484 = vst.msk [vmem:[#allocation2 + $0x50] sm:$0xff] %vm1473_vm0, %v2355_v17 }
 0x289   : > { %1485 = vst.msk [vmem:[#allocation2 + $0x58] sm:$0xff] %vm1473_vm0, %v2355_v17 }
 0x28a   : > { %1486 = vst.msk [vmem:[#allocation2 + $0x60] sm:$0xff] %vm1473_vm0, %v2355_v17 }
 0x28b   : > { %1487 = vst.msk [vmem:[#allocation2 + $0x68] sm:$0xff] %vm1473_vm0, %v2355_v17 }
 0x28c   : > { %1488 = vst.msk [vmem:[#allocation2 + $0x70] sm:$0xff] %vm1473_vm0, %v2355_v17 }
 0x28d   : > { %1489 = vst.msk [vmem:[#allocation2 + $0x78] sm:$0xff] %vm1473_vm0, %v2355_v17 }
 0x28e   : > { %1490 = vst.msk [vmem:[#allocation2 + $0x80] sm:$0xff] %vm1473_vm0, %v2355_v17 }
 0x28f   : > { %1491 = vst.msk [vmem:[#allocation2 + $0x88] sm:$0xff] %vm1473_vm0, %v2355_v17 }
 0x290   : > { %1492 = vst.msk [vmem:[#allocation2 + $0x90] sm:$0xff] %vm1473_vm0, %v2355_v17 }
 0x291   : > { %1493 = vst.msk [vmem:[#allocation2 + $0x98] sm:$0xff] %vm1473_vm0, %v2355_v17 }
 0x292   : > { %1494 = vst.msk [vmem:[#allocation2 + $0xa0] sm:$0xff] %vm1473_vm0, %v2355_v17 }
 0x293   : > { %1495 = vst.msk [vmem:[#allocation2 + $0xa8] sm:$0xff] %vm1473_vm0, %v2355_v17 }
 0x294   : > { %1496 = vst.msk [vmem:[#allocation2 + $0xb0] sm:$0xff] %vm1473_vm0, %v2355_v17 }
 0x295   : > { %1497 = vst.msk [vmem:[#allocation2 + $0xb8] sm:$0xff] %vm1473_vm0, %v2355_v17 }
 0x296   : > { %1498 = vst.msk [vmem:[#allocation2 + $0xc0] sm:$0xff] %vm1473_vm0, %v2355_v17 }
 0x297   : > { %1499 = vst.msk [vmem:[#allocation2 + $0xc8] sm:$0xff] %vm1473_vm0, %v2355_v17 }
 0x298   : > { %1500 = vst.msk [vmem:[#allocation2 + $0xd0] sm:$0xff] %vm1473_vm0, %v2355_v17 }
 0x299   : > { %1501 = vst.msk [vmem:[#allocation2 + $0xd8] sm:$0xff] %vm1473_vm0, %v2355_v17 }
 0x29a   : > { %1502 = vst.msk [vmem:[#allocation2 + $0xe0] sm:$0xff] %vm1473_vm0, %v2355_v17 }
 0x29b   : > { %1503 = vst.msk [vmem:[#allocation2 + $0xe8] sm:$0xff] %vm1473_vm0, %v2355_v17 }
 0x29c   : > { %1504 = vst.msk [vmem:[#allocation2 + $0xf0] sm:$0xff] %vm1473_vm0, %v2355_v17 }
 0x29d   : > { %1505 = vst.msk [vmem:[#allocation2 + $0xf8] sm:$0xff] %vm1473_vm0, %v2355_v17 }
 0x29e PF: > { %v1506_v21 = vld [vmem:[#allocation2] sm:$0xff]  ;;  %vm1570_vm1 = vcmask 7168   ;;  %v1507_v8 = vld [vmem:[#allocation2 + $0x8] sm:$0xff]  ;;  %v1508_v48 = vld [vmem:[#allocation2 + $0x10] sm:$0xff]  ;;  %p2008_p4 = scmp.ne.s32.totalorder %s2336_s23, 1 }
 0x29f   : > { %v1538_v49 = vadd.f32 %v1506_v21, %v3273_v52  ;;  %v1539_v13 = vadd.f32 %v1507_v8, %v3277_v55  ;;  %v1540_v37 = vadd.f32 %v1508_v48, %v3275_v38  ;;  %v1509_v35 = vld [vmem:[#allocation2 + $0x18] sm:$0xff]  ;;  %v1510_v15 = vld [vmem:[#allocation2 + $0x20] sm:$0xff]  ;;  %v1511_v24 = vld [vmem:[#allocation2 + $0x28] sm:$0xff] }
 0x2a0   : > { %v1541_v11 = vadd.f32 %v1509_v35, %v3279_v57  ;;  %v1512_v30 = vld [vmem:[#allocation2 + $0x30] sm:$0xff]  ;;  %v1542_v53 = vadd.f32 %v1510_v15, %v3285_v4  ;;  %v1513_v9 = vld [vmem:[#allocation2 + $0x38] sm:$0xff]  ;;  %v1543_v23 = vadd.f32 %v1511_v24, %v3281_v12  ;;  %v1514_v3 = vld [vmem:[#allocation2 + $0x40] sm:$0xff] }
 0x2a1   : > { %1571 = vst.msk [vmem:[#allocation2] sm:$0xff] %vm1570_vm1, %v1538_v49  ;;  %v1544_v44 = vadd.f32 %v1512_v30, %v3283_v16  ;;  %v1515_v10 = vld [vmem:[#allocation2 + $0x48] sm:$0xff]  ;;  %v1545_v28 = vadd.f32 %v1513_v9, %v3291_v40  ;;  %v1516_v25 = vld [vmem:[#allocation2 + $0x50] sm:$0xff]  ;;  %v1546_v33 = vadd.f32 %v1514_v3, %v3287_v43  ;;  %v1517_v34 = vld [vmem:[#allocation2 + $0x58] sm:$0xff] }
 0x2a2   : > { %1572 = vst.msk [vmem:[#allocation2 + $0x8] sm:$0xff] %vm1570_vm1, %v1539_v13  ;;  %v1547_v26 = vadd.f32 %v1515_v10, %v3289_v50  ;;  %v1518_v6 = vld [vmem:[#allocation2 + $0x60] sm:$0xff]  ;;  %v1548_v60 = vadd.f32 %v1516_v25, %v3297_v59  ;;  %v1519_v18 = vld [vmem:[#allocation2 + $0x68] sm:$0xff]  ;;  %v1549_v5 = vadd.f32 %v1517_v34, %v3293_v22  ;;  %v1520_v32 = vld [vmem:[#allocation2 + $0x70] sm:$0xff] }
 0x2a3   : > { %1573 = vst.msk [vmem:[#allocation2 + $0x10] sm:$0xff] %vm1570_vm1, %v1540_v37  ;;  %v1550_v54 = vadd.f32 %v1518_v6, %v3295_v27  ;;  %v1521_v1 = vld [vmem:[#allocation2 + $0x78] sm:$0xff]  ;;  %v1551_v7 = vadd.f32 %v1519_v18, %v3303_v0  ;;  %v1522_v61 = vld [vmem:[#allocation2 + $0x80] sm:$0xff]  ;;  %v1552_v52 = vadd.f32 %v1520_v32, %v3299_v56  ;;  %v1523_v38 = vld [vmem:[#allocation2 + $0x88] sm:$0xff] }
 0x2a4   : > { %1574 = vst.msk [vmem:[#allocation2 + $0x18] sm:$0xff] %vm1570_vm1, %v1541_v11  ;;  %v1553_v55 = vadd.f32 %v1521_v1, %v3301_v63  ;;  %v1524_v57 = vld [vmem:[#allocation2 + $0x90] sm:$0xff]  ;;  %v1554_v12 = vadd.f32 %v1522_v61, %v3309_v31  ;;  %v1525_v16 = vld [vmem:[#allocation2 + $0x98] sm:$0xff]  ;;  %v1555_v4 = vadd.f32 %v1523_v38, %v3305_v20  ;;  %v1526_v43 = vld [vmem:[#allocation2 + $0xa0] sm:$0xff] }
 0x2a5   : > { %1575 = vst.msk [vmem:[#allocation2 + $0x20] sm:$0xff] %vm1570_vm1, %v1542_v53  ;;  %v1556_v50 = vadd.f32 %v1524_v57, %v3307_v46  ;;  %v1527_v40 = vld [vmem:[#allocation2 + $0xa8] sm:$0xff]  ;;  %v1557_v22 = vadd.f32 %v1525_v16, %v3315_v19  ;;  %v1528_v27 = vld [vmem:[#allocation2 + $0xb0] sm:$0xff]  ;;  %v1558_v59 = vadd.f32 %v1526_v43, %v3311_v14  ;;  %v1529_v56 = vld [vmem:[#allocation2 + $0xb8] sm:$0xff] }
 0x2a6   : > { %1576 = vst.msk [vmem:[#allocation2 + $0x28] sm:$0xff] %vm1570_vm1, %v1543_v23  ;;  %v1559_v63 = vadd.f32 %v1527_v40, %v3313_v58  ;;  %v1530_v0 = vld [vmem:[#allocation2 + $0xc0] sm:$0xff]  ;;  %v1560_v20 = vadd.f32 %v1528_v27, %v3321_v2  ;;  %v1531_v46 = vld [vmem:[#allocation2 + $0xc8] sm:$0xff]  ;;  %v1561_v31 = vadd.f32 %v1529_v56, %v3317_v42  ;;  %v1532_v19 = vld [vmem:[#allocation2 + $0xd0] sm:$0xff] }
 0x2a7   : > { %1577 = vst.msk [vmem:[#allocation2 + $0x30] sm:$0xff] %vm1570_vm1, %v1544_v44  ;;  %v1562_v14 = vadd.f32 %v1530_v0, %v3319_v45  ;;  %v1533_v17 = vld [vmem:[#allocation2 + $0xd8] sm:$0xff]  ;;  %v1563_v58 = vadd.f32 %v1531_v46, %v3327_v41  ;;  %v1534_v21 = vld [vmem:[#allocation2 + $0xe0] sm:$0xff]  ;;  %v1564_v2 = vadd.f32 %v1532_v19, %v3323_v47  ;;  %v1535_v8 = vld [vmem:[#allocation2 + $0xe8] sm:$0xff] }
 0x2a8   : > { %1578 = vst.msk [vmem:[#allocation2 + $0x38] sm:$0xff] %vm1570_vm1, %v1545_v28  ;;  %v1565_v42 = vadd.f32 %v1533_v17, %v3325_v51  ;;  %v1536_v48 = vld [vmem:[#allocation2 + $0xf0] sm:$0xff]  ;;  %v1566_v45 = vadd.f32 %v1534_v21, %v3333_v62  ;;  %v1537_v49 = vld [vmem:[#allocation2 + $0xf8] sm:$0xff]  ;;  %v1567_v41 = vadd.f32 %v1535_v8, %v3329_v36 }
 0x2a9   : > { %1579 = vst.msk [vmem:[#allocation2 + $0x40] sm:$0xff] %vm1570_vm1, %v1546_v33  ;;  %v1568_v13 = vadd.f32 %v1536_v48, %v3331_v39  ;;  %v1569_v47 = vadd.f32 %v1537_v49, %v3335_v29 }
 0x2aa   : > { %1580 = vst.msk [vmem:[#allocation2 + $0x48] sm:$0xff] %vm1570_vm1, %v1547_v26 }
 0x2ab   : > { %1581 = vst.msk [vmem:[#allocation2 + $0x50] sm:$0xff] %vm1570_vm1, %v1548_v60 }
 0x2ac   : > { %1582 = vst.msk [vmem:[#allocation2 + $0x58] sm:$0xff] %vm1570_vm1, %v1549_v5 }
 0x2ad   : > { %1583 = vst.msk [vmem:[#allocation2 + $0x60] sm:$0xff] %vm1570_vm1, %v1550_v54 }
 0x2ae   : > { %1584 = vst.msk [vmem:[#allocation2 + $0x68] sm:$0xff] %vm1570_vm1, %v1551_v7 }
 0x2af   : > { %1585 = vst.msk [vmem:[#allocation2 + $0x70] sm:$0xff] %vm1570_vm1, %v1552_v52 }
 0x2b0   : > { %1586 = vst.msk [vmem:[#allocation2 + $0x78] sm:$0xff] %vm1570_vm1, %v1553_v55 }
 0x2b1   : > { %1587 = vst.msk [vmem:[#allocation2 + $0x80] sm:$0xff] %vm1570_vm1, %v1554_v12 }
 0x2b2   : > { %1588 = vst.msk [vmem:[#allocation2 + $0x88] sm:$0xff] %vm1570_vm1, %v1555_v4 }
 0x2b3   : > { %1589 = vst.msk [vmem:[#allocation2 + $0x90] sm:$0xff] %vm1570_vm1, %v1556_v50 }
 0x2b4   : > { %1590 = vst.msk [vmem:[#allocation2 + $0x98] sm:$0xff] %vm1570_vm1, %v1557_v22 }
 0x2b5   : > { %1591 = vst.msk [vmem:[#allocation2 + $0xa0] sm:$0xff] %vm1570_vm1, %v1558_v59 }
 0x2b6   : > { %1592 = vst.msk [vmem:[#allocation2 + $0xa8] sm:$0xff] %vm1570_vm1, %v1559_v63 }
 0x2b7   : > { %1593 = vst.msk [vmem:[#allocation2 + $0xb0] sm:$0xff] %vm1570_vm1, %v1560_v20 }
 0x2b8   : > { %1594 = vst.msk [vmem:[#allocation2 + $0xb8] sm:$0xff] %vm1570_vm1, %v1561_v31 }
 0x2b9   : > { %1595 = vst.msk [vmem:[#allocation2 + $0xc0] sm:$0xff] %vm1570_vm1, %v1562_v14 }
 0x2ba   : > { %1596 = vst.msk [vmem:[#allocation2 + $0xc8] sm:$0xff] %vm1570_vm1, %v1563_v58 }
 0x2bb   : > { %1597 = vst.msk [vmem:[#allocation2 + $0xd0] sm:$0xff] %vm1570_vm1, %v1564_v2 }
 0x2bc   : > { %1598 = vst.msk [vmem:[#allocation2 + $0xd8] sm:$0xff] %vm1570_vm1, %v1565_v42  ;;  %1606 = sbr.rel (%p2008_p4) target bundleno = 1166 (0x48e), region = 86 }
 0x2bd   : > { %1599 = vst.msk [vmem:[#allocation2 + $0xe0] sm:$0xff] %vm1570_vm1, %v1566_v45 }
 0x2be   : > { %1600 = vst.msk [vmem:[#allocation2 + $0xe8] sm:$0xff] %vm1570_vm1, %v1567_v41 }
 0x2bf   : > { %1601 = vst.msk [vmem:[#allocation2 + $0xf0] sm:$0xff] %vm1570_vm1, %v1568_v13 }
 0x2c0   : > { %1602 = vst.msk [vmem:[#allocation2 + $0xf8] sm:$0xff] %vm1570_vm1, %v1569_v47 }
 0x2c1   : > { %v1611_v51 = vld [vmem:[#allocation2 + $0x20] sm:$0xff]  ;;  %v1609_v36 = vld [vmem:[#allocation2 + $0x10] sm:$0xff]  ;;  %v2356_v37 = vmov 0   ;;  %v1610_v29 = vld [vmem:[#allocation2 + $0x18] sm:$0xff]  ;;  %v1775_v4 = vlaneseq  ;;  %vm1809_vm2 = vcmask 1041409   ;;  %vm1811_vm3 = vcmask 1042434  }
 0x2c2   : > { %v1607_v62 = vld [vmem:[#allocation2] sm:$0xff]  ;;  %2240 = vset.pattern.permute.xlu2 %v2356_v37  ;;  %2239 = vset.pattern.permute.xlu1 %v2356_v37  ;;  %v1608_v35 = vld [vmem:[#allocation2 + $0x8] sm:$0xff]  ;;  %v1617_v15 = vld [vmem:[#allocation2 + $0x50] sm:$0xff]  ;;  %vm1813_vm4 = vcmask 1043459   ;;  %vm1815_vm5 = vcmask 1044484   ;;  %vm1817_vm6 = vcmask 1045509  }
 0x2c3   : > { %2238 = vset.pattern.permute.xlu0 %v2356_v37  ;;  %1692 = vperm.xlu2 %2240, %v1611_v51   ;;  %v1615_v39 = vld [vmem:[#allocation2 + $0x40] sm:$0xff]  ;;  %v1612_v24 = vld [vmem:[#allocation2 + $0x28] sm:$0xff]  ;;  %v1614_v30 = vld [vmem:[#allocation2 + $0x38] sm:$0xff]  ;;  %v3436_v22 = vand.u32 127, %v1775_v4  ;;  %vm1819_vm7 = vcmask 1046534   ;;  %vm1821_vm8 = vcmask 1047559  }
 0x2c4   : > { %1686 = vperm.xlu1 %2239, %v1609_v36   ;;  %1680 = vperm.xlu0 %2238, %v1607_v62   ;;  %v1616_v11 = vld [vmem:[#allocation2 + $0x48] sm:$0xff]  ;;  %v1618_v53 = vld [vmem:[#allocation2 + $0x58] sm:$0xff]  ;;  %v1613_v9 = vld [vmem:[#allocation2 + $0x30] sm:$0xff]  ;;  %vm1880_vm9 = vcmask 261120  }
 0x2c5   : > { %v1624_v23 = vld [vmem:[#allocation2 + $0x88] sm:$0xff]  ;;  %v1623_v3 = vld [vmem:[#allocation2 + $0x80] sm:$0xff]  ;;  %v1621_v10 = vld [vmem:[#allocation2 + $0x70] sm:$0xff] }
 0x2c6   : > { %v1619_v44 = vld [vmem:[#allocation2 + $0x60] sm:$0xff]  ;;  %v1625_v28 = vld [vmem:[#allocation2 + $0x90] sm:$0xff]  ;;  %v1620_v25 = vld [vmem:[#allocation2 + $0x68] sm:$0xff] }
 0x2c7   : > { %v1627_v33 = vld [vmem:[#allocation2 + $0xa0] sm:$0xff]  ;;  %v1622_v34 = vld [vmem:[#allocation2 + $0x78] sm:$0xff]  ;;  %v1628_v6 = vld [vmem:[#allocation2 + $0xa8] sm:$0xff] }
 0x2c8   : > { %v1626_v26 = vld [vmem:[#allocation2 + $0x98] sm:$0xff]  ;;  %v1632_v60 = vld [vmem:[#allocation2 + $0xc8] sm:$0xff]  ;;  %v1631_v18 = vld [vmem:[#allocation2 + $0xc0] sm:$0xff] }
 0x2c9   : > { %v1634_v5 = vld [vmem:[#allocation2 + $0xd8] sm:$0xff]  ;;  %v1629_v32 = vld [vmem:[#allocation2 + $0xb0] sm:$0xff]  ;;  %v1636_v1 = vld [vmem:[#allocation2 + $0xe8] sm:$0xff] }
 0x2ca   : > { %v1633_v54 = vld [vmem:[#allocation2 + $0xd0] sm:$0xff]  ;;  %v1635_v7 = vld [vmem:[#allocation2 + $0xe0] sm:$0xff]  ;;  %v1630_v61 = vld [vmem:[#allocation2 + $0xb8] sm:$0xff] }
 0x2cb   : > { %1704 = vperm.xlu2 %2240, %v1615_v39   ;;  %v1638_v52 = vld [vmem:[#allocation2 + $0xf8] sm:$0xff]  ;;  %v1637_v38 = vld [vmem:[#allocation2 + $0xf0] sm:$0xff] }
 0x2cc   : > { %1689 = vperm.xlu1 %2239, %v1610_v29   ;;  %1683 = vperm.xlu0 %2238, %v1608_v35  }
 0x2d3   : > { %1710 = vperm.xlu2 %2240, %v1617_v15  }
 0x2d4   : > { %1695 = vperm.xlu1 %2239, %v1612_v24   ;;  %1707 = vperm.xlu0 %2238, %v1616_v11  }
 0x2db   : > { %1701 = vperm.xlu2 %2240, %v1614_v30  }
 0x2dc   : > { %1713 = vperm.xlu1 %2239, %v1618_v53   ;;  %1698 = vperm.xlu0 %2238, %v1613_v9  }
 0x2e3   : > { %1731 = vperm.xlu2 %2240, %v1624_v23  }
 0x2e4   : > { %1728 = vperm.xlu1 %2239, %v1623_v3   ;;  %1716 = vperm.xlu0 %2238, %v1619_v44  }
 0x2eb   : > { %1722 = vperm.xlu2 %2240, %v1621_v10  }
 0x2ec   : > { %1734 = vperm.xlu1 %2239, %v1625_v28   ;;  %1719 = vperm.xlu0 %2238, %v1620_v25  }
 0x2f3   : > { %1740 = vperm.xlu2 %2240, %v1627_v33  }
 0x2f4   : > { %1725 = vperm.xlu1 %2239, %v1622_v34   ;;  %1737 = vperm.xlu0 %2238, %v1626_v26  }
 0x2fb   : > { %1743 = vperm.xlu2 %2240, %v1628_v6   ;;  %v1642_v6 = vld [vmem:[%s3570_s3 + $0x18] sm:$0xff] }
 0x2fc   : > { %1755 = vperm.xlu1 %2239, %v1632_v60   ;;  %1752 = vperm.xlu0 %2238, %v1631_v18   ;;  %v1641_v60 = vld [vmem:[%s3570_s3 + $0x10] sm:$0xff]  ;;  %v1640_v18 = vld [vmem:[%s3570_s3 + $0x8] sm:$0xff] }
 0x2fd   : > { %1896 = vmatpush.msra.mxu0 %v1642_v6 }
 0x2ff   : > { %1897 = vmatpush.msra.mxu0 %v1641_v60 }
 0x301   : > { %1898 = vmatpush.msra.mxu0 %v1640_v18 }
 0x303   : > { %1761 = vperm.xlu2 %2240, %v1634_v5  }
 0x304   : > { %1746 = vperm.xlu1 %2239, %v1629_v32   ;;  %1758 = vperm.xlu0 %2238, %v1633_v54  }
 0x30b   : > { %1767 = vperm.xlu2 %2240, %v1636_v1   ;;  %v1639_v1 = vld [vmem:[%s3570_s3] sm:$0xff] }
 0x30c   : > { %1764 = vperm.xlu1 %2239, %v1635_v7   ;;  %1749 = vperm.xlu0 %2238, %v1630_v61  }
 0x30d   : > { %1899 = vmatpush.msra.mxu0 %v1639_v1 }
 0x314   : > { %1773 = vperm.xlu1 %2239, %v1638_v52   ;;  %1770 = vperm.xlu0 %2238, %v1637_v38  }
 0x31d   : > { %v1693_v55 = vpop.permute.xlu2 %1692 }
 0x31e   : > { %v1781_v58 = vperm.slane %v1693_v55, %v3436_v22 }
 0x325   : > { %v1705_v57 = vpop.permute.xlu2 %1704 }
 0x326   : > { %v1785_v37 = vperm.slane %v1705_v57, %v3436_v22 }
 0x32d   : > { %v1711_v43 = vpop.permute.xlu2 %1710 }
 0x32e   : > { %v1787_v24 = vperm.slane %v1711_v43, %v3436_v22 }
 0x335   : > { %v1702_v20 = vpop.permute.xlu2 %1701 }
 0x336   : > { %v1687_v12 = vpop.permute.xlu1 %1686  ;;  %v1681_v16 = vpop.permute.xlu0 %1680  ;;  %v1784_v48 = vperm.slane %v1702_v20, %v3436_v22 }
 0x337   : > { %v1777_v59 = vperm.slane %v1681_v16, %v3436_v22  ;;  %v1779_v46 = vperm.slane %v1687_v12, %v3436_v22 }
 0x33d   : > { %v1732_v49 = vpop.permute.xlu2 %1731 }
 0x33e   : > { %v1690_v50 = vpop.permute.xlu1 %1689  ;;  %v1684_v40 = vpop.permute.xlu0 %1683  ;;  %v1794_v52 = vperm.slane %v1732_v49, %v3436_v22 }
 0x33f   : > { %v1778_v27 = vperm.slane %v1684_v40, %v3436_v22  ;;  %v1780_v19 = vperm.slane %v1690_v50, %v3436_v22 }
 0x341   : > { %v1810_v56 = vsel %vm1809_vm2, %v1778_v27, %v1777_v59 }
 0x342   : > { %v1812_v31 = vsel %vm1811_vm3, %v1779_v46, %v1810_v56 }
 0x343   : > { %v1814_v17 = vsel %vm1813_vm4, %v1780_v19, %v1812_v31 }
 0x344   : > { %v1816_v8 = vsel %vm1815_vm5, %v1781_v58, %v1814_v17 }
 0x345   : > { %v1723_v36 = vpop.permute.xlu2 %1722 }
 0x346   : > { %v1696_v63 = vpop.permute.xlu1 %1695  ;;  %v1708_v0 = vpop.permute.xlu0 %1707  ;;  %v1791_v10 = vperm.slane %v1723_v36, %v3436_v22 }
 0x347   : > { %v1782_v14 = vperm.slane %v1696_v63, %v3436_v22  ;;  %v1786_v62 = vperm.slane %v1708_v0, %v3436_v22 }
 0x349   : > { %v1818_v45 = vsel %vm1817_vm6, %v1782_v14, %v1816_v8  ;;  %v1823_v35 = vsel %vm1809_vm2, %v1786_v62, %v1785_v37 }
 0x34a   : > { %v1824_v53 = vsel %vm1811_vm3, %v1787_v24, %v1823_v35 }
 0x34d   : > { %v1741_v3 = vpop.permute.xlu2 %1740 }
 0x34e   : > { %v1714_v21 = vpop.permute.xlu1 %1713  ;;  %v1699_v2 = vpop.permute.xlu0 %1698  ;;  %v1797_v50 = vperm.slane %v1741_v3, %v3436_v22 }
 0x34f   : > { %v1783_v42 = vperm.slane %v1699_v2, %v3436_v22  ;;  %v1788_v15 = vperm.slane %v1714_v21, %v3436_v22 }
 0x351   : > { %v1820_v41 = vsel %vm1819_vm7, %v1783_v42, %v1818_v45  ;;  %v1825_v9 = vsel %vm1813_vm4, %v1788_v15, %v1824_v53 }
 0x352   : > { %v1822_v13 = vsel %vm1821_vm8, %v1784_v48, %v1820_v41 }
 0x353   : > { %1848 = vxpose.xlu2.b32.start [1/4] (short) (narrow) %v1822_v13, 8 }
 0x355   : > { %v1744_v54 = vpop.permute.xlu2 %1743 }
 0x356   : > { %v1729_v47 = vpop.permute.xlu1 %1728  ;;  %v1717_v51 = vpop.permute.xlu0 %1716  ;;  %v1798_v63 = vperm.slane %v1744_v54, %v3436_v22 }
 0x357   : > { %v1789_v11 = vperm.slane %v1717_v51, %v3436_v22  ;;  %v1793_v7 = vperm.slane %v1729_v47, %v3436_v22 }
 0x359   : > { %v1826_v23 = vsel %vm1815_vm5, %v1789_v11, %v1825_v9  ;;  %v1830_v12 = vsel %vm1809_vm2, %v1794_v52, %v1793_v7 }
 0x35d   : > { %v1762_v4 = vpop.permute.xlu2 %1761 }
 0x35e   : > { %v1735_v39 = vpop.permute.xlu1 %1734  ;;  %v1720_v29 = vpop.permute.xlu0 %1719  ;;  %v1804_v8 = vperm.slane %v1762_v4, %v3436_v22 }
 0x35f   : > { %v1790_v30 = vperm.slane %v1720_v29, %v3436_v22  ;;  %v1795_v61 = vperm.slane %v1735_v39, %v3436_v22  ;;  %v2241_v29 = vld [vmem:[%s3571_s4] ss:$0 sm:$0xff] }
 0x361   : > { %v1827_v44 = vsel %vm1817_vm6, %v1790_v30, %v1826_v23  ;;  %v1831_v16 = vsel %vm1811_vm3, %v1795_v61, %v1830_v12 }
 0x362   : > { %v1828_v34 = vsel %vm1819_vm7, %v1791_v10, %v1827_v44 }
 0x365   : > { %v1768_v42 = vpop.permute.xlu2 %1767 }
 0x366   : > { %v1726_v28 = vpop.permute.xlu1 %1725  ;;  %v1738_v25 = vpop.permute.xlu0 %1737  ;;  %v1806_v49 = vperm.slane %v1768_v42, %v3436_v22 }
 0x367   : > { %v1792_v33 = vperm.slane %v1726_v28, %v3436_v22  ;;  %v1796_v38 = vperm.slane %v1738_v25, %v3436_v22 }
 0x369   : > { %v1829_v26 = vsel %vm1821_vm8, %v1792_v33, %v1828_v34  ;;  %v1832_v43 = vsel %vm1813_vm4, %v1796_v38, %v1831_v16 }
 0x36a   : > { %1849 = vxpose.xlu2.b32.cont [2/4] (short) (narrow) %v1829_v26, 8  ;;  %v1833_v40 = vsel %vm1815_vm5, %v1797_v50, %v1832_v43 }
 0x36b   : > { %v1834_v31 = vsel %vm1817_vm6, %v1798_v63, %v1833_v40 }
 0x36e   : > { %v1756_v5 = vpop.permute.xlu1 %1755  ;;  %v1753_v32 = vpop.permute.xlu0 %1752 }
 0x36f   : > { %v1802_v27 = vperm.slane %v1756_v5, %v3436_v22  ;;  %v1801_v59 = vperm.slane %v1753_v32, %v3436_v22 }
 0x371   : > { %v1837_v14 = vsel %vm1809_vm2, %v1802_v27, %v1801_v59 }
 0x376   : > { %v1747_v55 = vpop.permute.xlu1 %1746  ;;  %v1759_v57 = vpop.permute.xlu0 %1758 }
 0x377   : > { %v1799_v56 = vperm.slane %v1747_v55, %v3436_v22  ;;  %v1803_v0 = vperm.slane %v1759_v57, %v3436_v22 }
 0x379   : > { %v1835_v17 = vsel %vm1819_vm7, %v1799_v56, %v1834_v31  ;;  %v1838_v58 = vsel %vm1811_vm3, %v1803_v0, %v1837_v14 }
 0x37a   : > { %v1839_v48 = vsel %vm1813_vm4, %v1804_v8, %v1838_v58 }
 0x37e   : > { %v1765_v20 = vpop.permute.xlu1 %1764  ;;  %v1750_v46 = vpop.permute.xlu0 %1749 }
 0x37f   : > { %v1800_v19 = vperm.slane %v1750_v46, %v3436_v22  ;;  %v1805_v21 = vperm.slane %v1765_v20, %v3436_v22 }
 0x381   : > { %v1836_v2 = vsel %vm1821_vm8, %v1800_v19, %v1835_v17  ;;  %v1840_v45 = vsel %vm1815_vm5, %v1805_v21, %v1839_v48 }
 0x382   : > { %1850 = vxpose.xlu2.b32.cont [3/4] (short) (narrow) %v1836_v2, 8  ;;  %v1841_v36 = vsel %vm1817_vm6, %v1806_v49, %v1840_v45 }
 0x386   : > { %v1774_v41 = vpop.permute.xlu1 %1773  ;;  %v1771_v13 = vpop.permute.xlu0 %1770 }
 0x387   : > { %v1808_v47 = vperm.slane %v1774_v41, %v3436_v22  ;;  %v1807_v51 = vperm.slane %v1771_v13, %v3436_v22 }
 0x389   : > { %v1842_v62 = vsel %vm1819_vm7, %v1807_v51, %v1841_v36 }
 0x38a   : > { %v1843_v37 = vsel %vm1821_vm8, %v1808_v47, %v1842_v62 }
 0x38b   : > { %1851 = vxpose.xlu2.b32.end [4/4] (short) (narrow) %v1843_v37, 8 }
 0x40c   : > { %v1864_v39 = vpop.trf.xlu2 }
 0x40d   : > { %2009 = vmatmul.msk.f32.vlgmr.msra.gmra.mxu0 %vm1880_vm9, %v1864_v39 }
 0x48a   : > { %v1901_v35 = vpop.f32.mrf.mxu0 }
 0x48b   : > { %v1902_v15 = vadd.f32 %v2241_v29, %v1901_v35 }
 0x48d   : > { %1904 = vst [vmem:[%s281_s7] sm:$0xff] %v1902_v15 }
 0x48e PF: > { %s2011_s9 = sshll.u32 %s2340_s24, 3  ;;  %s1918_s29 = sshll.u32 %s281_s7, 4  ;;  %s1919_s29 = int_to_ptr.vmem [resolvable:$true] %s1918_s29 }
 0x48f   : > { %s1916_s28 = scalar_lea.hbm %s3572_s5, %s2011_s9  ;;  %s1906_s8 = scalar_lea.sflag [#allocation5], %s279_s13 }
 0x490   : > { %s1920_s21 = sshll.u32 %s1916_s28, 4  ;;  %s2262_s1 = scalar_lea.hbm %s3572_s5, 16  ;;  %s1921_s21 = int_to_ptr.hbm [resolvable:$true] %s1920_s21 }
 0x491   : > { %s2256_s12 = sshra.s32 %s1921_s21, 4  ;;  %s2257_s12 = int_to_ptr.hbm [resolvable:$true] %s2256_s12 }
 0x492   : > { %s2258_s23 = scalar_lea.hbm %s2257_s12, 8  ;;  %p2263_p9 = scmp.lt.s32.totalorder %s2257_s12, %s3572_s5 }
 0x493   : > { %p2259_p5 = scmp.ne.s32.totalorder %s2257_s12, %s2258_s23  ;;  %p2264_p10 = scmp.lt.s32.totalorder %s2262_s1, %s2258_s23 }
 0x495   : > { %p2260_p6 = pnand %p2259_p5, %p2459_p7  ;;  %p2265_p11 = por %p2264_p10, %p2263_p9 }
 0x497   : > { %p2261_p8 = pneg %p2260_p6 }
 0x499   : > { %p2266_p13 = pnand %p2265_p11, %p2261_p8 }
 0x49b   : > { %2269 = shalt.err (!%p2266_p13)
}
 0x49c   : > { %2016 = dma.vmem_to_hbm [thread:$0]  (%p2459_p7), %s1919_s29, 128, %s1921_s21, %s1906_s8  }
 0x49d PF: > { %p2022_p0 = scmp.ge.s32.totalorder %s2352_s27, 2  ;;  %s1932_s13 = sand.u32 1, %s2316_s18  }
 0x49e   : > { %s1933_s0 = scalar_lea.sflag [#allocation5], %s1932_s13 }
 0x49f   : > { %p2019_p1 = pnand %p2022_p0, %p2467_p12 }
 0x4a1   : > { %p2020_p2 = pneg %p2019_p1 }
 0x4a3   : > { %2311 = dma.done.wait (%p2020_p2), %s1933_s0, 128  }
 0x4a4   : > { %2313 = vsyncadd (%p2020_p2), %s1933_s0, 4294967168  ;;  %s18_s27 = sadd.s32 1, %s2352_s27   ;;  %s3582_s1 = sld [smem:[#allocation7_spill]] }
 0x4a5   : > { %p15_p3 = scmp.ge.s32.totalorder %s18_s27, 6   ;;  %s3583_s18 = smov %s2320_s19 }
 0x4a6   : > { %s3584_s19 = smov %s2324_s20  ;;  %s3585_s20 = smov %s2472_s15 }
 0x4a7   : > { %s3586_s21 = smov %s2332_s22  ;;  %s3587_s22 = smov %s2475_s16 }
 0x4a8   : > { %s3588_s23 = smov %s2344_s25  ;;  %s3589_s24 = smov %s2348_s26 }
 0x4a9   : > { %s3590_s25 = smov %s3593_s30  ;;  %17 = sbr.rel (!%p15_p3) target bundleno = 9 (0x9), region = 126 }
 0x4aa   : > { %s3591_s26 = smov %s3582_s1 }
 0x4ae   :  { %1939 = vsyncpa [#allocation5], 1 }
 0x4af   :  { %1941 = vsyncpa [#allocation5 + $0x1], 1 }

</bundles_post_ra>
